<compile_context>
chip_gen: v7x
topology: tpu7x:2x2x1
jax: 0.10.0
libtpu: 0.0.40
codegen_flags: <defaults>
</compile_context>

<pallas_src>
import functools

import jax
import jax.numpy as jnp
from jax import lax
from jax.experimental import pallas as pl
from jax.experimental.pallas import tpu as pltpu

# ----------------------------- configuration -------------------------------
CH_LIST = [4, 8]           # channels of the encoder features
FEATS_SIZE = [16, 8]       # spatial size (D=H=W) of the encoder features
MIN_SIZE = 8               # target spatial size
DOWN_KERNEL = [3, 5, 7]    # AdaptiveSpatialCondenser branch kernels
X_CHANNELS = 8             # channels of `x` (the tensor being gated)
BATCH = 2
BN_EPS = 1e-5
GRN_EPS = 1e-6
TAP_CHUNK = 256            # K per MXU contraction / per tap-grid step


# ----------------------------- Pallas kernel --------------------------------
def _dcla_kernel(C1, nb, m, e0p_ref, enc1_ref, x_ref, wcond_ref, wmask_ref,
                 cvec_ref, pmat_ref, o_ref, acc_ref, spad_ref):
    """DCLAv2 forward; grid = (batch, tap-chunk)."""
    f32 = jnp.float32
    S = m ** 3
    t = pl.program_id(1)

    @pl.when(t == 0)
    def _():
        acc_ref[...] = jnp.zeros_like(acc_ref)

    # Three stride-2 condenser branches (k=3,5,7, fusion='add') as one bf16 MXU
    # contraction over this tap chunk, accumulated in f32.
    acc_ref[...] += jnp.dot(wcond_ref[0:nb, :], e0p_ref[0],
                            preferred_element_type=f32)

    @pl.when(t == pl.num_programs(1) - 1)
    def _():
        # per-branch bias (+folded BN) + ReLU, then 'add' fusion of branches
        sbr = jnp.maximum(acc_ref[...] + cvec_ref[2:2 + nb, :], 0.0)
        s0 = jnp.sum(sbr, axis=0, keepdims=True)                      # (1, S)

        # squeeze(enc1): 1x1x1 conv (+folded BN) + ReLU6
        s1 = jnp.clip(jnp.dot(pmat_ref[1:2, 0:C1], enc1_ref[0],
                              preferred_element_type=f32)
                      + pmat_ref[1:2, 8:9], 0.0, 6.0)                 # (1, S)

        # stack both levels as one (2, S) map inside the zero-padded scratch
        # (the same buffer serves as the shift source for the depthwise conv)
        spad_ref[...] = jnp.zeros_like(spad_ref)
        spad_ref[0:1, 128:128 + S] = s0
        spad_ref[1:2, 128:128 + S] = s1
        s = spad_ref[:, 128:128 + S]                                  # (2, S)

        # GRN3D folded into a per-channel scale alpha on the depthwise conv
        gx = jnp.sqrt(jnp.sum(s * s, axis=1, keepdims=True))          # (2, 1)
        gmean = jnp.mean(gx, axis=0, keepdims=True) + GRN_EPS
        alpha = 1.0 + pmat_ref[4:6, 0:1] * (gx / gmean)               # (2, 1)

        # depthwise 3x3x3 conv (zero pad): 27 static shifted windows of the
        # zero-padded map times precomputed (weight * validity-mask) rows
        conv = jnp.zeros_like(s)
        for tap in range(27):
            dd = tap // 9 - 1
            dh = (tap // 3) % 3 - 1
            dw = tap % 3 - 1
            delta = dd * m * m + dh * m + dw
            conv = conv + (wmask_ref[2 * tap:2 * tap + 2, :]
                           * spad_ref[:, 128 + delta:128 + delta + S])
        dwv = alpha * conv + cvec_ref[0:2, :]     # + grn_beta*conv(1) + b_dw

        # pointwise 1x1x1 conv (+folded BN) + ReLU6 on the stacked map (VPU)
        f = jnp.clip(pmat_ref[4:6, 4:5] * dwv[0:1, :]
                     + pmat_ref[4:6, 5:6] * dwv[1:2, :]
                     + pmat_ref[4:6, 3:4], 0.0, 6.0)                  # (2, S)

        # attention 1x1x1 conv + sigmoid, gate x
        logit = (pmat_ref[6:7, 0:1] * f[0:1, :]
                 + pmat_ref[6:7, 1:2] * f[1:2, :]
                 + pmat_ref[6:7, 2:3])
        o_ref[0] = x_ref[0] * jax.nn.sigmoid(logit)


# ------------------------------ JAX glue -------------------------------------
def strided_patches(xpad, k, stride, out_size):
    """xpad: (N, Dp, Dp, Dp) padded volumes -> (N, k^3, out^3) patches."""
    n = xpad.shape[0]
    pats = []
    for td in range(k):
        for th in range(k):
            for tw in range(k):
                pats.append(xpad[:, td:td + stride * out_size:stride,
                                    th:th + stride * out_size:stride,
                                    tw:tw + stride * out_size:stride])
    return jnp.stack(pats, axis=1).reshape(n, k ** 3, out_size ** 3)


def fold_bn(w, b, gamma, beta, mean, var):
    """Fold eval-mode BatchNorm3d into conv weight/bias (per output channel)."""
    a = gamma / jnp.sqrt(var + BN_EPS)
    return w * a[:, None], (b - mean) * a + beta


def dcla_forward_pallas(encoder_feats, x, params):
    B, Cx = x.shape[0], x.shape[1]
    m = MIN_SIZE
    S = m ** 3
    L = len(CH_LIST)
    nb = len(DOWN_KERNEL)
    C0 = encoder_feats[0].shape[1]
    C1 = encoder_feats[1].shape[1]
    assert L == 2 and encoder_feats[1].shape[2] == m
    assert encoder_feats[0].shape[2] == 2 * m
    # TODO(synk): the fused kernel is specialized to this two-level config
    # (single stride-2 condenser stage, 16^3 -> 8^3); deeper pyramids would
    # need the generic multi-stage condenser path.

    ktot = sum(k ** 3 for k in DOWN_KERNEL)            # 495
    T = pl.cdiv(ktot, TAP_CHUNK) * TAP_CHUNK           # 512, MXU-aligned tap axis
    NT = T // TAP_CHUNK

    # ---- fold eval-mode BatchNorm into the two squeeze convs ----
    sp0, sp1 = params["squeeze"]
    w0, b0 = fold_bn(sp0["w"].reshape(1, C0), sp0["b"], sp0["bn_gamma"],
                     sp0["bn_beta"], sp0["bn_mean"], sp0["bn_var"])
    w1, b1 = fold_bn(sp1["w"].reshape(1, C1), sp1["b"], sp1["bn_gamma"],
                     sp1["bn_beta"], sp1["bn_mean"], sp1["bn_var"])

    # ---- pre-apply squeeze(enc0) (+BN) + ReLU6 on the raw 16^3 volume, THEN
    #      zero-pad & strided im2col: pad-after-squeeze matches the reference
    #      and makes the patch stream single-channel ----
    y0 = jnp.clip(jnp.einsum("c,bcdhw->bdhw", w0[0], encoder_feats[0]) + b0[0],
                  0.0, 6.0)
    pats = []
    for k in DOWN_KERNEL:
        p = k // 2
        pats.append(strided_patches(
            jnp.pad(y0, ((0, 0), (p, p), (p, p), (p, p))), k, 2, m))
    # NOTE: tap columns >= ktot of both E0P and wcond are zero, so padding the
    # tap axis to T contributes nothing to the contraction.
    E0P = jnp.pad(jnp.concatenate(pats, axis=1),
                  ((0, 0), (0, T - ktot), (0, 0))).astype(jnp.bfloat16)

    # ---- condenser weights/biases (+folded BN), one row per branch ----
    wcond = jnp.zeros((16, T), jnp.float32)            # 16 rows: bf16 sublane tile
    bcond = jnp.zeros((nb,), jnp.float32)
    off = 0
    for r, k in enumerate(DOWN_KERNEL):
        stages = params["down"][0][r]
        assert len(stages) == 1
        st = stages[0]
        wf, bf = fold_bn(st["w"].reshape(1, k ** 3), st["b"], st["bn_gamma"],
                         st["bn_beta"], st["bn_mean"], st["bn_var"])
        wcond = wcond.at[r, off:off + k ** 3].set(wf[0])
        bcond = bcond.at[r].set(bf[0])
        off += k ** 3
    wcond = wcond.astype(jnp.bfloat16)

    # ---- depthwise 3x3x3 taps: (weight * validity-mask) rows + folded
    #      grn_beta*conv(ones)+b_dw constant ----
    fp = params["fusion"]
    wdw = fp["w_dw"].reshape(L, 27)
    ii = jnp.arange(S)
    di, hi, wi = ii // (m * m), (ii // m) % m, ii % m
    taps = jnp.arange(27)
    dd, dh, dw = taps // 9 - 1, (taps // 3) % 3 - 1, taps % 3 - 1
    valid = ((di[None] + dd[:, None] >= 0) & (di[None] + dd[:, None] < m) &
             (hi[None] + dh[:, None] >= 0) & (hi[None] + dh[:, None] < m) &
             (wi[None] + dw[:, None] >= 0) & (wi[None] + dw[:, None] < m))
    wmask3 = wdw.T[:, :, None] * valid[:, None, :].astype(jnp.float32)  # (27,L,S)
    wmask = jnp.zeros((56, S), jnp.float32).at[:27 * L, :].set(
        wmask3.reshape(27 * L, S))                                      # row = tap*L + l
    maskconv = wmask3.sum(axis=0)                                       # conv of ones
    dwconst = fp["grn_beta"][:, None] * maskconv + fp["b_dw"][:, None]  # (L, S)

    wpw, bpw = fold_bn(fp["w_pw"].reshape(L, L), fp["b_pw"], fp["bn_gamma"],
                       fp["bn_beta"], fp["bn_mean"], fp["bn_var"])
    ap = params["attn"]

    # ---- packed constants ----
    cvec = jnp.zeros((8, S), jnp.float32)
    cvec = cvec.at[0:L, :].set(dwconst)
    cvec = cvec.at[2:2 + nb, :].set(jnp.broadcast_to(bcond[:, None], (nb, S)))

    pmat = jnp.zeros((8, 128), jnp.float32)
    pmat = pmat.at[1, 0:C1].set(w1[0]).at[1, 8].set(b1[0])
    pmat = pmat.at[4:6, 0].set(fp["grn_gamma"])
    pmat = pmat.at[4:6, 3].set(bpw)
    pmat = pmat.at[4:6, 4:6].set(wpw)
    pmat = pmat.at[6, 0:L].set(ap["w"].reshape(L)).at[6, 2].set(ap["b"][0])

    enc1_flat = encoder_feats[1].reshape(B, C1, S)
    x_flat = x.reshape(B, Cx, S)

    kernel = functools.partial(_dcla_kernel, C1, nb, m)
    out = pl.pallas_call(
        kernel,
        out_shape=jax.ShapeDtypeStruct((B, Cx, S), jnp.float32),
        grid=(B, NT),
        in_specs=[
            pl.BlockSpec((1, TAP_CHUNK, S), lambda b, t: (b, t, 0)),   # patches (bf16)
            pl.BlockSpec((1, C1, S), lambda b, t: (b, 0, 0)),          # enc1
            pl.BlockSpec((1, Cx, S), lambda b, t: (b, 0, 0)),          # x
            pl.BlockSpec((16, TAP_CHUNK), lambda b, t: (0, t)),        # wcond (bf16)
            pl.BlockSpec((56, S), lambda b, t: (0, 0)),                # dw weight*mask
            pl.BlockSpec((8, S), lambda b, t: (0, 0)),                 # dwconst + bcond
            pl.BlockSpec((8, 128), lambda b, t: (0, 0)),               # packed scalars
        ],
        out_specs=pl.BlockSpec((1, Cx, S), lambda b, t: (b, 0, 0)),
        scratch_shapes=[
            pltpu.VMEM((nb, S), jnp.float32),        # condenser accumulator
            pltpu.VMEM((L, S + 256), jnp.float32),   # zero-padded fused map
        ],
        compiler_params=pltpu.CompilerParams(
            dimension_semantics=("parallel", "arbitrary"),
            vmem_limit_bytes=16 * 1024 * 1024,
        ),
    )(E0P, enc1_flat, x_flat, wcond, wmask, cvec, pmat)
    return out.reshape(x.shape)


# ----------------------- deterministic parameter init -----------------------
def init_params(key):
    def nrm(k, shape, scale=0.2):
        return scale * jax.random.normal(k, shape, jnp.float32)

    keys = iter(jax.random.split(key, 256))
    params = {"squeeze": [], "down": [], "fusion": {}, "attn": {}}
    for ch in CH_LIST:
        params["squeeze"].append({
            "w": nrm(next(keys), (1, ch, 1, 1, 1)),
            "b": nrm(next(keys), (1,), 0.1),
            "bn_gamma": 1.0 + nrm(next(keys), (1,), 0.1),
            "bn_beta": nrm(next(keys), (1,), 0.1),
            "bn_mean": nrm(next(keys), (1,), 0.1),
            "bn_var": 1.0 + jnp.abs(nrm(next(keys), (1,), 0.1)),
        })
    for fs in FEATS_SIZE:
        branches = []
        for k in DOWN_KERNEL:
            stages = []
            cur = fs
            while cur > MIN_SIZE:
                stages.append({
                    "w": nrm(next(keys), (1, 1, k, k, k), 0.5 / k),
                    "b": nrm(next(keys), (1,), 0.1),
                    "bn_gamma": 1.0 + nrm(next(keys), (1,), 0.1),
                    "bn_beta": nrm(next(keys), (1,), 0.1),
                    "bn_mean": nrm(next(keys), (1,), 0.1),
                    "bn_var": 1.0 + jnp.abs(nrm(next(keys), (1,), 0.1)),
                })
                cur //= 2
            branches.append(stages)
        params["down"].append(branches)
    L = len(CH_LIST)
    params["fusion"] = {
        # TODO(synk): GRN3D source was not provided; ConvNeXt-V2 GRN semantics
        # assumed (gamma/beta are zero-init in the original; nonzero here to
        # exercise the code path).
        "grn_gamma": nrm(next(keys), (L,), 0.1),
        "grn_beta": nrm(next(keys), (L,), 0.1),
        "w_dw": nrm(next(keys), (L, 1, 3, 3, 3), 0.2),
        "b_dw": nrm(next(keys), (L,), 0.1),
        "w_pw": nrm(next(keys), (L, L, 1, 1, 1), 0.3),
        "b_pw": nrm(next(keys), (L,), 0.1),
        "bn_gamma": 1.0 + nrm(next(keys), (L,), 0.1),
        "bn_beta": nrm(next(keys), (L,), 0.1),
        "bn_mean": nrm(next(keys), (L,), 0.1),
        "bn_var": 1.0 + jnp.abs(nrm(next(keys), (L,), 0.1)),
    }
    params["attn"] = {
        "w": nrm(next(keys), (1, L, 1, 1, 1), 0.5),
        "b": nrm(next(keys), (1,), 0.1),
    }
    return params


# ----------------------------- pure-JAX reference ---------------------------
def conv3d_ref(x, w, b, stride=1, padding=0, groups=1):
    dn = lax.conv_dimension_numbers(x.shape, w.shape, ("NCDHW", "OIDHW", "NCDHW"))
    y = lax.conv_general_dilated(x, w, (stride,) * 3, [(padding, padding)] * 3,
                                 dimension_numbers=dn, feature_group_count=groups,
                                 precision=lax.Precision.HIGHEST)
    return y + b.reshape(1, -1, 1, 1, 1)


def bn3d_ref(x, gamma, beta, mean, var):
    sh = (1, -1, 1, 1, 1)
    return ((x - mean.reshape(sh)) / jnp.sqrt(var.reshape(sh) + BN_EPS)
            * gamma.reshape(sh) + beta.reshape(sh))


def grn3d_ref(x, gamma, beta):
    gx = jnp.sqrt(jnp.sum(x * x, axis=(2, 3, 4), keepdims=True))
    nx = gx / (jnp.mean(gx, axis=1, keepdims=True) + GRN_EPS)
    return gamma.reshape(1, -1, 1, 1, 1) * (x * nx) + beta.reshape(1, -1, 1, 1, 1) + x


def dcla_forward_ref(encoder_feats, x, params):
    relu6 = lambda v: jnp.clip(v, 0.0, 6.0)
    squeezed = []
    for i, e in enumerate(encoder_feats):
        sp = params["squeeze"][i]
        y = conv3d_ref(e, sp["w"], sp["b"])
        y = bn3d_ref(y, sp["bn_gamma"], sp["bn_beta"], sp["bn_mean"], sp["bn_var"])
        squeezed.append(relu6(y))
    downs = []
    for i, feat in enumerate(squeezed):
        if feat.shape[2] != MIN_SIZE:
            branch_outs = []
            for bi, k in enumerate(DOWN_KERNEL):
                cur = feat
                for st in params["down"][i][bi]:
                    cur = conv3d_ref(cur, st["w"], st["b"], stride=2, padding=k // 2)
                    cur = bn3d_ref(cur, st["bn_gamma"], st["bn_beta"],
                                   st["bn_mean"], st["bn_var"])
                    cur = jnp.maximum(cur, 0.0)
                branch_outs.append(cur)
            feat = sum(branch_outs)
        downs.append(feat[:, 0])
    s = jnp.stack(downs, axis=1)
    fp = params["fusion"]
    L = len(CH_LIST)
    y = grn3d_ref(s, fp["grn_gamma"], fp["grn_beta"])
    y = conv3d_ref(y, fp["w_dw"], fp["b_dw"], padding=1, groups=L)
    y = conv3d_ref(y, fp["w_pw"], fp["b_pw"])
    y = bn3d_ref(y, fp["bn_gamma"], fp["bn_beta"], fp["bn_mean"], fp["bn_var"])
    y = relu6(y)
    attn = jax.nn.sigmoid(conv3d_ref(y, params["attn"]["w"], params["attn"]["b"]))
    return attn * x


# ---------------------------------- main -------------------------------------
if __name__ == "__main__":
    key = jax.random.PRNGKey(0)
    kp, k0, k1, kx = jax.random.split(key, 4)
    params = init_params(kp)

    encoder_feats = [
        jax.random.normal(k0, (BATCH, CH_LIST[0]) + (FEATS_SIZE[0],) * 3, jnp.float32),
        jax.random.normal(k1, (BATCH, CH_LIST[1]) + (FEATS_SIZE[1],) * 3, jnp.float32),
    ]
    x = jax.random.normal(kx, (BATCH, X_CHANNELS) + (MIN_SIZE,) * 3, jnp.float32)

    fwd = jax.jit(dcla_forward_pallas)
    out = jax.block_until_ready(fwd(encoder_feats, x, params))

    ref = dcla_forward_ref(encoder_feats, x, params)
    assert out.shape == x.shape
    err = float(jnp.max(jnp.abs(out - ref)))
    if not (bool(jnp.isfinite(out).all()) and err < 5e-2):
        raise AssertionError(f"Pallas/reference mismatch: max abs err = {err}")
    print("KERNEL_OK")
</pallas_src>

<mosaic_0001>
module attributes {stable_mosaic.version = 11 : i64} {
  func.func @_dcla_kernel(%arg0: i32, %arg1: i32, %arg2: memref<1x256x512xbf16, #tpu.memory_space<vmem>>, %arg3: memref<1x8x512xf32, #tpu.memory_space<vmem>>, %arg4: memref<1x8x512xf32, #tpu.memory_space<vmem>>, %arg5: memref<16x256xbf16, #tpu.memory_space<vmem>>, %arg6: memref<56x512xf32, #tpu.memory_space<vmem>>, %arg7: memref<8x512xf32, #tpu.memory_space<vmem>>, %arg8: memref<8x128xf32, #tpu.memory_space<vmem>>, %arg9: memref<1x8x512xf32, #tpu.memory_space<vmem>>, %arg10: memref<3x512xf32, #tpu.memory_space<vmem>>, %arg11: memref<2x768xf32, #tpu.memory_space<vmem>>) attributes {dimension_semantics = [#tpu.dimension_semantics<parallel>, #tpu.dimension_semantics<arbitrary>], iteration_bounds = array<i64: 2, 2>, scalar_prefetch = 0 : i64, scratch_operands = 2 : i64, tpu.core_type = #tpu.core_type<tc>, window_params = [{transform_indices = @transform_0, window_bounds = array<i64: 1, 256, 512>}, {transform_indices = @transform_1, window_bounds = array<i64: 1, 8, 512>}, {transform_indices = @transform_2, window_bounds = array<i64: 1, 8, 512>}, {transform_indices = @transform_3, window_bounds = array<i64: 16, 256>}, {pipeline_mode = #tpu.pipeline_mode<synchronous>, transform_indices = @transform_4, window_bounds = array<i64: 56, 512>}, {pipeline_mode = #tpu.pipeline_mode<synchronous>, transform_indices = @transform_5, window_bounds = array<i64: 8, 512>}, {pipeline_mode = #tpu.pipeline_mode<synchronous>, transform_indices = @transform_6, window_bounds = array<i64: 8, 128>}, {transform_indices = @transform_7, window_bounds = array<i64: 1, 8, 512>}]} {
    %c0_i32 = arith.constant 0 : i32
    %0 = arith.cmpi eq, %arg1, %c0_i32 : i32
    %1 = arith.extui %0 : i1 to i32
    %c0_i32_0 = arith.constant 0 : i32
    %2 = arith.cmpi ne, %1, %c0_i32_0 : i32
    scf.if %2 {
      %cst_10 = arith.constant 0.000000e+00 : f32
      %13 = vector.broadcast %cst_10 : f32 to vector<3x512xf32>
      %c0_11 = arith.constant 0 : index
      %c0_12 = arith.constant 0 : index
      %14 = vector.load %arg10[%c0_11, %c0_12] : memref<3x512xf32, #tpu.memory_space<vmem>>, vector<3x512xf32>
      tpu.vector_store %arg10[%c0_11, %c0_12], %13 {strides = array<i32>} : memref<3x512xf32, #tpu.memory_space<vmem>>, vector<3x512xf32>,
    } else {
    }
    %c0 = arith.constant 0 : index
    %c0_1 = arith.constant 0 : index
    %3 = vector.load %arg10[%c0, %c0_1] : memref<3x512xf32, #tpu.memory_space<vmem>>, vector<3x512xf32>
    %c0_2 = arith.constant 0 : index
    %c0_3 = arith.constant 0 : index
    %4 = vector.load %arg5[%c0_2, %c0_3] : memref<16x256xbf16, #tpu.memory_space<vmem>>, vector<3x256xbf16>
    %c0_4 = arith.constant 0 : index
    %c0_5 = arith.constant 0 : index
    %c0_6 = arith.constant 0 : index
    %5 = vector.load %arg2[%c0_4, %c0_5, %c0_6] : memref<1x256x512xbf16, #tpu.memory_space<vmem>>, vector<1x256x512xbf16>
    %6 = vector.shape_cast %5 : vector<1x256x512xbf16> to vector<256x512xbf16>
    %cst = arith.constant dense<0.000000e+00> : vector<3x512xf32>
    %7 = tpu.matmul %4, %6, %cst {dimension_numbers = #tpu.dot_dimension_numbers<[1], [0], [0], [1], [0, 0, 1, 1], [], []>} : vector<3x256xbf16>, vector<256x512xbf16>, vector<3x512xf32> -> vector<3x512xf32>
    %8 = arith.addf %3, %7 : vector<3x512xf32>
    %c0_7 = arith.constant 0 : index
    %c0_8 = arith.constant 0 : index
    %9 = vector.load %arg10[%c0_7, %c0_8] : memref<3x512xf32, #tpu.memory_space<vmem>>, vector<3x512xf32>
    tpu.vector_store %arg10[%c0_7, %c0_8], %8 {strides = array<i32>} : memref<3x512xf32, #tpu.memory_space<vmem>>, vector<3x512xf32>,
    %c1_i32 = arith.constant 1 : i32
    %10 = arith.cmpi eq, %arg1, %c1_i32 : i32
    %11 = arith.extui %10 : i1 to i32
    %c0_i32_9 = arith.constant 0 : i32
    %12 = arith.cmpi ne, %11, %c0_i32_9 : i32
    scf.if %12 {
      %c0_10 = arith.constant 0 : index
      %c0_11 = arith.constant 0 : index
      %13 = vector.load %arg10[%c0_10, %c0_11] : memref<3x512xf32, #tpu.memory_space<vmem>>, vector<3x512xf32>
      %c2 = arith.constant 2 : index
      %c0_12 = arith.constant 0 : index
      %14 = vector.load %arg7[%c2, %c0_12] : memref<8x512xf32, #tpu.memory_space<vmem>>, vector<3x512xf32>
      %15 = arith.addf %13, %14 : vector<3x512xf32>
      %cst_13 = arith.constant 0.000000e+00 : f32
      %16 = vector.broadcast %cst_13 : f32 to vector<3x512xf32>
      %17 = arith.maximumf %15, %16 : vector<3x512xf32>
      %cst_14 = arith.constant dense<0.000000e+00> : vector<512xf32>
      %18 = vector.multi_reduction <add>, %17, %cst_14 [0] : vector<3x512xf32> to vector<512xf32>
      %19 = vector.shape_cast %18 : vector<512xf32> to vector<1x512xf32>
      %c1 = arith.constant 1 : index
      %c0_15 = arith.constant 0 : index
      %20 = vector.load %arg8[%c1, %c0_15] : memref<8x128xf32, #tpu.memory_space<vmem>>, vector<1x8xf32>
      %c0_16 = arith.constant 0 : index
      %c0_17 = arith.constant 0 : index
      %c0_18 = arith.constant 0 : index
      %21 = vector.load %arg3[%c0_16, %c0_17, %c0_18] : memref<1x8x512xf32, #tpu.memory_space<vmem>>, vector<1x8x512xf32>
      %22 = vector.shape_cast %21 : vector<1x8x512xf32> to vector<8x512xf32>
      %cst_19 = arith.constant dense<0.000000e+00> : vector<1x512xf32>
      %23 = tpu.matmul %20, %22, %cst_19 {dimension_numbers = #tpu.dot_dimension_numbers<[1], [0], [0], [1], [0, 0, 1, 1], [], []>} : vector<1x8xf32>, vector<8x512xf32>, vector<1x512xf32> -> vector<1x512xf32>
      %c1_20 = arith.constant 1 : index
      %c8 = arith.constant 8 : index
      %24 = vector.load %arg8[%c1_20, %c8] : memref<8x128xf32, #tpu.memory_space<vmem>>, vector<1x1xf32>
      %25 = vector.broadcast %24 : vector<1x1xf32> to vector<1x512xf32>
      %26 = arith.addf %23, %25 : vector<1x512xf32>
      %cst_21 = arith.constant 0.000000e+00 : f32
      %cst_22 = arith.constant 6.000000e+00 : f32
      %27 = vector.broadcast %cst_21 : f32 to vector<1x512xf32>
      %28 = arith.maximumf %27, %26 : vector<1x512xf32>
      %29 = vector.broadcast %cst_22 : f32 to vector<1x512xf32>
      %30 = arith.minimumf %29, %28 : vector<1x512xf32>
      %cst_23 = arith.constant 0.000000e+00 : f32
      %31 = vector.broadcast %cst_23 : f32 to vector<2x768xf32>
      %c0_24 = arith.constant 0 : index
      %c0_25 = arith.constant 0 : index
      %32 = vector.load %arg11[%c0_24, %c0_25] : memref<2x768xf32, #tpu.memory_space<vmem>>, vector<2x768xf32>
      tpu.vector_store %arg11[%c0_24, %c0_25], %31 {strides = array<i32>} : memref<2x768xf32, #tpu.memory_space<vmem>>, vector<2x768xf32>,
      %c0_26 = arith.constant 0 : index
      %c128 = arith.constant 128 : index
      %33 = vector.load %arg11[%c0_26, %c128] : memref<2x768xf32, #tpu.memory_space<vmem>>, vector<1x512xf32>
      tpu.vector_store %arg11[%c0_26, %c128], %19 {strides = array<i32>} : memref<2x768xf32, #tpu.memory_space<vmem>>, vector<1x512xf32>,
      %c1_27 = arith.constant 1 : index
      %c128_28 = arith.constant 128 : index
      %34 = vector.load %arg11[%c1_27, %c128_28] : memref<2x768xf32, #tpu.memory_space<vmem>>, vector<1x512xf32>
      tpu.vector_store %arg11[%c1_27, %c128_28], %30 {strides = array<i32>} : memref<2x768xf32, #tpu.memory_space<vmem>>, vector<1x512xf32>,
      %c0_29 = arith.constant 0 : index
      %c128_30 = arith.constant 128 : index
      %35 = vector.load %arg11[%c0_29, %c128_30] : memref<2x768xf32, #tpu.memory_space<vmem>>, vector<2x512xf32>
      %36 = arith.mulf %35, %35 : vector<2x512xf32>
      %cst_31 = arith.constant dense<0.000000e+00> : vector<2xf32>
      %37 = vector.multi_reduction <add>, %36, %cst_31 [1] : vector<2x512xf32> to vector<2xf32>
      %38 = vector.shape_cast %37 : vector<2xf32> to vector<2x1xf32>
      %39 = math.sqrt %38 : vector<2x1xf32>
      %cst_32 = arith.constant dense<0.000000e+00> : vector<1xf32>
      %40 = vector.multi_reduction <add>, %39, %cst_32 [0] : vector<2x1xf32> to vector<1xf32>
      %41 = vector.shape_cast %40 : vector<1xf32> to vector<1x1xf32>
      %cst_33 = arith.constant 2.000000e+00 : f32
      %42 = vector.broadcast %cst_33 : f32 to vector<1x1xf32>
      %43 = arith.divf %41, %42 : vector<1x1xf32>
      %cst_34 = arith.constant 9.99999997E-7 : f32
      %44 = vector.broadcast %cst_34 : f32 to vector<1x1xf32>
      %45 = arith.addf %43, %44 : vector<1x1xf32>
      %c4 = arith.constant 4 : index
      %c0_35 = arith.constant 0 : index
      %46 = vector.load %arg8[%c4, %c0_35] : memref<8x128xf32, #tpu.memory_space<vmem>>, vector<2x1xf32>
      %47 = vector.broadcast %45 : vector<1x1xf32> to vector<2x1xf32>
      %48 = arith.divf %39, %47 : vector<2x1xf32>
      %49 = arith.mulf %46, %48 : vector<2x1xf32>
      %cst_36 = arith.constant 1.000000e+00 : f32
      %50 = vector.broadcast %cst_36 : f32 to vector<2x1xf32>
      %51 = arith.addf %50, %49 : vector<2x1xf32>
      %cst_37 = arith.constant 0.000000e+00 : f32
      %52 = vector.broadcast %cst_37 : f32 to vector<2x512xf32>
      %c0_38 = arith.constant 0 : index
      %c0_39 = arith.constant 0 : index
      %53 = vector.load %arg6[%c0_38, %c0_39] : memref<56x512xf32, #tpu.memory_space<vmem>>, vector<2x512xf32>
      %c0_40 = arith.constant 0 : index
      %c55 = arith.constant 55 : index
      %54 = vector.load %arg11[%c0_40, %c55] : memref<2x768xf32, #tpu.memory_space<vmem>>, vector<2x512xf32>
      %55 = arith.mulf %53, %54 : vector<2x512xf32>
      %56 = arith.addf %52, %55 : vector<2x512xf32>
      %c2_41 = arith.constant 2 : index
      %c0_42 = arith.constant 0 : index
      %57 = vector.load %arg6[%c2_41, %c0_42] : memref<56x512xf32, #tpu.memory_space<vmem>>, vector<2x512xf32>
      %c0_43 = arith.constant 0 : index
      %c56 = arith.constant 56 : index
      %58 = vector.load %arg11[%c0_43, %c56] : memref<2x768xf32, #tpu.memory_space<vmem>>, vector<2x512xf32>
      %59 = arith.mulf %57, %58 : vector<2x512xf32>
      %60 = arith.addf %56, %59 : vector<2x512xf32>
      %c4_44 = arith.constant 4 : index
      %c0_45 = arith.constant 0 : index
      %61 = vector.load %arg6[%c4_44, %c0_45] : memref<56x512xf32, #tpu.memory_space<vmem>>, vector<2x512xf32>
      %c0_46 = arith.constant 0 : index
      %c57 = arith.constant 57 : index
      %62 = vector.load %arg11[%c0_46, %c57] : memref<2x768xf32, #tpu.memory_space<vmem>>, vector<2x512xf32>
      %63 = arith.mulf %61, %62 : vector<2x512xf32>
      %64 = arith.addf %60, %63 : vector<2x512xf32>
      %c6 = arith.constant 6 : index
      %c0_47 = arith.constant 0 : index
      %65 = vector.load %arg6[%c6, %c0_47] : memref<56x512xf32, #tpu.memory_space<vmem>>, vector<2x512xf32>
      %c0_48 = arith.constant 0 : index
      %c63 = arith.constant 63 : index
      %66 = vector.load %arg11[%c0_48, %c63] : memref<2x768xf32, #tpu.memory_space<vmem>>, vector<2x512xf32>
      %67 = arith.mulf %65, %66 : vector<2x512xf32>
      %68 = arith.addf %64, %67 : vector<2x512xf32>
      %c8_49 = arith.constant 8 : index
      %c0_50 = arith.constant 0 : index
      %69 = vector.load %arg6[%c8_49, %c0_50] : memref<56x512xf32, #tpu.memory_space<vmem>>, vector<2x512xf32>
      %c0_51 = arith.constant 0 : index
      %c64 = arith.constant 64 : index
      %70 = vector.load %arg11[%c0_51, %c64] : memref<2x768xf32, #tpu.memory_space<vmem>>, vector<2x512xf32>
      %71 = arith.mulf %69, %70 : vector<2x512xf32>
      %72 = arith.addf %68, %71 : vector<2x512xf32>
      %c10 = arith.constant 10 : index
      %c0_52 = arith.constant 0 : index
      %73 = vector.load %arg6[%c10, %c0_52] : memref<56x512xf32, #tpu.memory_space<vmem>>, vector<2x512xf32>
      %c0_53 = arith.constant 0 : index
      %c65 = arith.constant 65 : index
      %74 = vector.load %arg11[%c0_53, %c65] : memref<2x768xf32, #tpu.memory_space<vmem>>, vector<2x512xf32>
      %75 = arith.mulf %73, %74 : vector<2x512xf32>
      %76 = arith.addf %72, %75 : vector<2x512xf32>
      %c12 = arith.constant 12 : index
      %c0_54 = arith.constant 0 : index
      %77 = vector.load %arg6[%c12, %c0_54] : memref<56x512xf32, #tpu.memory_space<vmem>>, vector<2x512xf32>
      %c0_55 = arith.constant 0 : index
      %c71 = arith.constant 71 : index
      %78 = vector.load %arg11[%c0_55, %c71] : memref<2x768xf32, #tpu.memory_space<vmem>>, vector<2x512xf32>
      %79 = arith.mulf %77, %78 : vector<2x512xf32>
      %80 = arith.addf %76, %79 : vector<2x512xf32>
      %c14 = arith.constant 14 : index
      %c0_56 = arith.constant 0 : index
      %81 = vector.load %arg6[%c14, %c0_56] : memref<56x512xf32, #tpu.memory_space<vmem>>, vector<2x512xf32>
      %c0_57 = arith.constant 0 : index
      %c72 = arith.constant 72 : index
      %82 = vector.load %arg11[%c0_57, %c72] : memref<2x768xf32, #tpu.memory_space<vmem>>, vector<2x512xf32>
      %83 = arith.mulf %81, %82 : vector<2x512xf32>
      %84 = arith.addf %80, %83 : vector<2x512xf32>
      %c16 = arith.constant 16 : index
      %c0_58 = arith.constant 0 : index
      %85 = vector.load %arg6[%c16, %c0_58] : memref<56x512xf32, #tpu.memory_space<vmem>>, vector<2x512xf32>
      %c0_59 = arith.constant 0 : index
      %c73 = arith.constant 73 : index
      %86 = vector.load %arg11[%c0_59, %c73] : memref<2x768xf32, #tpu.memory_space<vmem>>, vector<2x512xf32>
      %87 = arith.mulf %85, %86 : vector<2x512xf32>
      %88 = arith.addf %84, %87 : vector<2x512xf32>
      %c18 = arith.constant 18 : index
      %c0_60 = arith.constant 0 : index
      %89 = vector.load %arg6[%c18, %c0_60] : memref<56x512xf32, #tpu.memory_space<vmem>>, vector<2x512xf32>
      %c0_61 = arith.constant 0 : index
      %c119 = arith.constant 119 : index
      %90 = vector.load %arg11[%c0_61, %c119] : memref<2x768xf32, #tpu.memory_space<vmem>>, vector<2x512xf32>
      %91 = arith.mulf %89, %90 : vector<2x512xf32>
      %92 = arith.addf %88, %91 : vector<2x512xf32>
      %c20 = arith.constant 20 : index
      %c0_62 = arith.constant 0 : index
      %93 = vector.load %arg6[%c20, %c0_62] : memref<56x512xf32, #tpu.memory_space<vmem>>, vector<2x512xf32>
      %c0_63 = arith.constant 0 : index
      %c120 = arith.constant 120 : index
      %94 = vector.load %arg11[%c0_63, %c120] : memref<2x768xf32, #tpu.memory_space<vmem>>, vector<2x512xf32>
      %95 = arith.mulf %93, %94 : vector<2x512xf32>
      %96 = arith.addf %92, %95 : vector<2x512xf32>
      %c22 = arith.constant 22 : index
      %c0_64 = arith.constant 0 : index
      %97 = vector.load %arg6[%c22, %c0_64] : memref<56x512xf32, #tpu.memory_space<vmem>>, vector<2x512xf32>
      %c0_65 = arith.constant 0 : index
      %c121 = arith.constant 121 : index
      %98 = vector.load %arg11[%c0_65, %c121] : memref<2x768xf32, #tpu.memory_space<vmem>>, vector<2x512xf32>
      %99 = arith.mulf %97, %98 : vector<2x512xf32>
      %100 = arith.addf %96, %99 : vector<2x512xf32>
      %c24 = arith.constant 24 : index
      %c0_66 = arith.constant 0 : index
      %101 = vector.load %arg6[%c24, %c0_66] : memref<56x512xf32, #tpu.memory_space<vmem>>, vector<2x512xf32>
      %c0_67 = arith.constant 0 : index
      %c127 = arith.constant 127 : index
      %102 = vector.load %arg11[%c0_67, %c127] : memref<2x768xf32, #tpu.memory_space<vmem>>, vector<2x512xf32>
      %103 = arith.mulf %101, %102 : vector<2x512xf32>
      %104 = arith.addf %100, %103 : vector<2x512xf32>
      %c26 = arith.constant 26 : index
      %c0_68 = arith.constant 0 : index
      %105 = vector.load %arg6[%c26, %c0_68] : memref<56x512xf32, #tpu.memory_space<vmem>>, vector<2x512xf32>
      %c0_69 = arith.constant 0 : index
      %c128_70 = arith.constant 128 : index
      %106 = vector.load %arg11[%c0_69, %c128_70] : memref<2x768xf32, #tpu.memory_space<vmem>>, vector<2x512xf32>
      %107 = arith.mulf %105, %106 : vector<2x512xf32>
      %108 = arith.addf %104, %107 : vector<2x512xf32>
      %c28 = arith.constant 28 : index
      %c0_71 = arith.constant 0 : index
      %109 = vector.load %arg6[%c28, %c0_71] : memref<56x512xf32, #tpu.memory_space<vmem>>, vector<2x512xf32>
      %c0_72 = arith.constant 0 : index
      %c129 = arith.constant 129 : index
      %110 = vector.load %arg11[%c0_72, %c129] : memref<2x768xf32, #tpu.memory_space<vmem>>, vector<2x512xf32>
      %111 = arith.mulf %109, %110 : vector<2x512xf32>
      %112 = arith.addf %108, %111 : vector<2x512xf32>
      %c30 = arith.constant 30 : index
      %c0_73 = arith.constant 0 : index
      %113 = vector.load %arg6[%c30, %c0_73] : memref<56x512xf32, #tpu.memory_space<vmem>>, vector<2x512xf32>
      %c0_74 = arith.constant 0 : index
      %c135 = arith.constant 135 : index
      %114 = vector.load %arg11[%c0_74, %c135] : memref<2x768xf32, #tpu.memory_space<vmem>>, vector<2x512xf32>
      %115 = arith.mulf %113, %114 : vector<2x512xf32>
      %116 = arith.addf %112, %115 : vector<2x512xf32>
      %c32 = arith.constant 32 : index
      %c0_75 = arith.constant 0 : index
      %117 = vector.load %arg6[%c32, %c0_75] : memref<56x512xf32, #tpu.memory_space<vmem>>, vector<2x512xf32>
      %c0_76 = arith.constant 0 : index
      %c136 = arith.constant 136 : index
      %118 = vector.load %arg11[%c0_76, %c136] : memref<2x768xf32, #tpu.memory_space<vmem>>, vector<2x512xf32>
      %119 = arith.mulf %117, %118 : vector<2x512xf32>
      %120 = arith.addf %116, %119 : vector<2x512xf32>
      %c34 = arith.constant 34 : index
      %c0_77 = arith.constant 0 : index
      %121 = vector.load %arg6[%c34, %c0_77] : memref<56x512xf32, #tpu.memory_space<vmem>>, vector<2x512xf32>
      %c0_78 = arith.constant 0 : index
      %c137 = arith.constant 137 : index
      %122 = vector.load %arg11[%c0_78, %c137] : memref<2x768xf32, #tpu.memory_space<vmem>>, vector<2x512xf32>
      %123 = arith.mulf %121, %122 : vector<2x512xf32>
      %124 = arith.addf %120, %123 : vector<2x512xf32>
      %c36 = arith.constant 36 : index
      %c0_79 = arith.constant 0 : index
      %125 = vector.load %arg6[%c36, %c0_79] : memref<56x512xf32, #tpu.memory_space<vmem>>, vector<2x512xf32>
      %c0_80 = arith.constant 0 : index
      %c183 = arith.constant 183 : index
      %126 = vector.load %arg11[%c0_80, %c183] : memref<2x768xf32, #tpu.memory_space<vmem>>, vector<2x512xf32>
      %127 = arith.mulf %125, %126 : vector<2x512xf32>
      %128 = arith.addf %124, %127 : vector<2x512xf32>
      %c38 = arith.constant 38 : index
      %c0_81 = arith.constant 0 : index
      %129 = vector.load %arg6[%c38, %c0_81] : memref<56x512xf32, #tpu.memory_space<vmem>>, vector<2x512xf32>
      %c0_82 = arith.constant 0 : index
      %c184 = arith.constant 184 : index
      %130 = vector.load %arg11[%c0_82, %c184] : memref<2x768xf32, #tpu.memory_space<vmem>>, vector<2x512xf32>
      %131 = arith.mulf %129, %130 : vector<2x512xf32>
      %132 = arith.addf %128, %131 : vector<2x512xf32>
      %c40 = arith.constant 40 : index
      %c0_83 = arith.constant 0 : index
      %133 = vector.load %arg6[%c40, %c0_83] : memref<56x512xf32, #tpu.memory_space<vmem>>, vector<2x512xf32>
      %c0_84 = arith.constant 0 : index
      %c185 = arith.constant 185 : index
      %134 = vector.load %arg11[%c0_84, %c185] : memref<2x768xf32, #tpu.memory_space<vmem>>, vector<2x512xf32>
      %135 = arith.mulf %133, %134 : vector<2x512xf32>
      %136 = arith.addf %132, %135 : vector<2x512xf32>
      %c42 = arith.constant 42 : index
      %c0_85 = arith.constant 0 : index
      %137 = vector.load %arg6[%c42, %c0_85] : memref<56x512xf32, #tpu.memory_space<vmem>>, vector<2x512xf32>
      %c0_86 = arith.constant 0 : index
      %c191 = arith.constant 191 : index
      %138 = vector.load %arg11[%c0_86, %c191] : memref<2x768xf32, #tpu.memory_space<vmem>>, vector<2x512xf32>
      %139 = arith.mulf %137, %138 : vector<2x512xf32>
      %140 = arith.addf %136, %139 : vector<2x512xf32>
      %c44 = arith.constant 44 : index
      %c0_87 = arith.constant 0 : index
      %141 = vector.load %arg6[%c44, %c0_87] : memref<56x512xf32, #tpu.memory_space<vmem>>, vector<2x512xf32>
      %c0_88 = arith.constant 0 : index
      %c192 = arith.constant 192 : index
      %142 = vector.load %arg11[%c0_88, %c192] : memref<2x768xf32, #tpu.memory_space<vmem>>, vector<2x512xf32>
      %143 = arith.mulf %141, %142 : vector<2x512xf32>
      %144 = arith.addf %140, %143 : vector<2x512xf32>
      %c46 = arith.constant 46 : index
      %c0_89 = arith.constant 0 : index
      %145 = vector.load %arg6[%c46, %c0_89] : memref<56x512xf32, #tpu.memory_space<vmem>>, vector<2x512xf32>
      %c0_90 = arith.constant 0 : index
      %c193 = arith.constant 193 : index
      %146 = vector.load %arg11[%c0_90, %c193] : memref<2x768xf32, #tpu.memory_space<vmem>>, vector<2x512xf32>
      %147 = arith.mulf %145, %146 : vector<2x512xf32>
      %148 = arith.addf %144, %147 : vector<2x512xf32>
      %c48 = arith.constant 48 : index
      %c0_91 = arith.constant 0 : index
      %149 = vector.load %arg6[%c48, %c0_91] : memref<56x512xf32, #tpu.memory_space<vmem>>, vector<2x512xf32>
      %c0_92 = arith.constant 0 : index
      %c199 = arith.constant 199 : index
      %150 = vector.load %arg11[%c0_92, %c199] : memref<2x768xf32, #tpu.memory_space<vmem>>, vector<2x512xf32>
      %151 = arith.mulf %149, %150 : vector<2x512xf32>
      %152 = arith.addf %148, %151 : vector<2x512xf32>
      %c50 = arith.constant 50 : index
      %c0_93 = arith.constant 0 : index
      %153 = vector.load %arg6[%c50, %c0_93] : memref<56x512xf32, #tpu.memory_space<vmem>>, vector<2x512xf32>
      %c0_94 = arith.constant 0 : index
      %c200 = arith.constant 200 : index
      %154 = vector.load %arg11[%c0_94, %c200] : memref<2x768xf32, #tpu.memory_space<vmem>>, vector<2x512xf32>
      %155 = arith.mulf %153, %154 : vector<2x512xf32>
      %156 = arith.addf %152, %155 : vector<2x512xf32>
      %c52 = arith.constant 52 : index
      %c0_95 = arith.constant 0 : index
      %157 = vector.load %arg6[%c52, %c0_95] : memref<56x512xf32, #tpu.memory_space<vmem>>, vector<2x512xf32>
      %c0_96 = arith.constant 0 : index
      %c201 = arith.constant 201 : index
      %158 = vector.load %arg11[%c0_96, %c201] : memref<2x768xf32, #tpu.memory_space<vmem>>, vector<2x512xf32>
      %159 = arith.mulf %157, %158 : vector<2x512xf32>
      %160 = arith.addf %156, %159 : vector<2x512xf32>
      %161 = vector.broadcast %51 : vector<2x1xf32> to vector<2x512xf32>
      %162 = arith.mulf %161, %160 : vector<2x512xf32>
      %c0_97 = arith.constant 0 : index
      %c0_98 = arith.constant 0 : index
      %163 = vector.load %arg7[%c0_97, %c0_98] : memref<8x512xf32, #tpu.memory_space<vmem>>, vector<2x512xf32>
      %164 = arith.addf %162, %163 : vector<2x512xf32>
      %c4_99 = arith.constant 4 : index
      %c4_100 = arith.constant 4 : index
      %165 = vector.load %arg8[%c4_99, %c4_100] : memref<8x128xf32, #tpu.memory_space<vmem>>, vector<2x1xf32>
      %166 = vector.extract_strided_slice %164 {offsets = [0, 0], sizes = [1, 512], strides = [1, 1]} : vector<2x512xf32> to vector<1x512xf32>
      %167 = vector.broadcast %165 : vector<2x1xf32> to vector<2x512xf32>
      %168 = vector.broadcast %166 : vector<1x512xf32> to vector<2x512xf32>
      %169 = arith.mulf %167, %168 : vector<2x512xf32>
      %c4_101 = arith.constant 4 : index
      %c5 = arith.constant 5 : index
      %170 = vector.load %arg8[%c4_101, %c5] : memref<8x128xf32, #tpu.memory_space<vmem>>, vector<2x1xf32>
      %171 = vector.extract_strided_slice %164 {offsets = [1, 0], sizes = [1, 512], strides = [1, 1]} : vector<2x512xf32> to vector<1x512xf32>
      %172 = vector.broadcast %170 : vector<2x1xf32> to vector<2x512xf32>
      %173 = vector.broadcast %171 : vector<1x512xf32> to vector<2x512xf32>
      %174 = arith.mulf %172, %173 : vector<2x512xf32>
      %175 = arith.addf %169, %174 : vector<2x512xf32>
      %c4_102 = arith.constant 4 : index
      %c3 = arith.constant 3 : index
      %176 = vector.load %arg8[%c4_102, %c3] : memref<8x128xf32, #tpu.memory_space<vmem>>, vector<2x1xf32>
      %177 = vector.broadcast %176 : vector<2x1xf32> to vector<2x512xf32>
      %178 = arith.addf %175, %177 : vector<2x512xf32>
      %cst_103 = arith.constant 0.000000e+00 : f32
      %cst_104 = arith.constant 6.000000e+00 : f32
      %179 = vector.broadcast %cst_103 : f32 to vector<2x512xf32>
      %180 = arith.maximumf %179, %178 : vector<2x512xf32>
      %181 = vector.broadcast %cst_104 : f32 to vector<2x512xf32>
      %182 = arith.minimumf %181, %180 : vector<2x512xf32>
      %c6_105 = arith.constant 6 : index
      %c0_106 = arith.constant 0 : index
      %183 = vector.load %arg8[%c6_105, %c0_106] : memref<8x128xf32, #tpu.memory_space<vmem>>, vector<1x1xf32>
      %184 = vector.extract_strided_slice %182 {offsets = [0, 0], sizes = [1, 512], strides = [1, 1]} : vector<2x512xf32> to vector<1x512xf32>
      %185 = vector.broadcast %183 : vector<1x1xf32> to vector<1x512xf32>
      %186 = arith.mulf %185, %184 : vector<1x512xf32>
      %c6_107 = arith.constant 6 : index
      %c1_108 = arith.constant 1 : index
      %187 = vector.load %arg8[%c6_107, %c1_108] : memref<8x128xf32, #tpu.memory_space<vmem>>, vector<1x1xf32>
      %188 = vector.extract_strided_slice %182 {offsets = [1, 0], sizes = [1, 512], strides = [1, 1]} : vector<2x512xf32> to vector<1x512xf32>
      %189 = vector.broadcast %187 : vector<1x1xf32> to vector<1x512xf32>
      %190 = arith.mulf %189, %188 : vector<1x512xf32>
      %191 = arith.addf %186, %190 : vector<1x512xf32>
      %c6_109 = arith.constant 6 : index
      %c2_110 = arith.constant 2 : index
      %192 = vector.load %arg8[%c6_109, %c2_110] : memref<8x128xf32, #tpu.memory_space<vmem>>, vector<1x1xf32>
      %193 = vector.broadcast %192 : vector<1x1xf32> to vector<1x512xf32>
      %194 = arith.addf %191, %193 : vector<1x512xf32>
      %c0_111 = arith.constant 0 : index
      %c0_112 = arith.constant 0 : index
      %c0_113 = arith.constant 0 : index
      %195 = vector.load %arg4[%c0_111, %c0_112, %c0_113] : memref<1x8x512xf32, #tpu.memory_space<vmem>>, vector<1x8x512xf32>
      %196 = vector.shape_cast %195 : vector<1x8x512xf32> to vector<8x512xf32>
      %197 = arith.negf %194 : vector<1x512xf32>
      %198 = math.exp %197 : vector<1x512xf32>
      %cst_114 = arith.constant 1.000000e+00 : f32
      %199 = vector.broadcast %cst_114 : f32 to vector<1x512xf32>
      %200 = arith.addf %199, %198 : vector<1x512xf32>
      %201 = arith.divf %199, %200 : vector<1x512xf32>
      %202 = vector.broadcast %201 : vector<1x512xf32> to vector<8x512xf32>
      %203 = arith.mulf %196, %202 : vector<8x512xf32>
      %c0_115 = arith.constant 0 : index
      %c0_116 = arith.constant 0 : index
      %c0_117 = arith.constant 0 : index
      %204 = vector.load %arg9[%c0_115, %c0_116, %c0_117] : memref<1x8x512xf32, #tpu.memory_space<vmem>>, vector<1x8x512xf32>
      %205 = vector.shape_cast %204 : vector<1x8x512xf32> to vector<8x512xf32>
      %206 = vector.shape_cast %203 : vector<8x512xf32> to vector<1x8x512xf32>
      tpu.vector_store %arg9[%c0_115, %c0_116, %c0_117], %206 {strides = array<i32>} : memref<1x8x512xf32, #tpu.memory_space<vmem>>, vector<1x8x512xf32>,
    } else {
    }
    return
  }
  func.func @transform_0(%arg0: i32, %arg1: i32) -> (i32, i32, i32) {
    %c0_i32 = arith.constant 0 : i32
    %c0_i32_0 = arith.constant 0 : i32
    return %arg0, %arg1, %c0_i32 : i32, i32, i32
  }
  func.func @transform_1(%arg0: i32, %arg1: i32) -> (i32, i32, i32) {
    %c0_i32 = arith.constant 0 : i32
    %c0_i32_0 = arith.constant 0 : i32
    %c0_i32_1 = arith.constant 0 : i32
    return %arg0, %c0_i32, %c0_i32_0 : i32, i32, i32
  }
  func.func @transform_2(%arg0: i32, %arg1: i32) -> (i32, i32, i32) {
    %c0_i32 = arith.constant 0 : i32
    %c0_i32_0 = arith.constant 0 : i32
    %c0_i32_1 = arith.constant 0 : i32
    return %arg0, %c0_i32, %c0_i32_0 : i32, i32, i32
  }
  func.func @transform_3(%arg0: i32, %arg1: i32) -> (i32, i32) {
    %c0_i32 = arith.constant 0 : i32
    %c0_i32_0 = arith.constant 0 : i32
    return %c0_i32, %arg1 : i32, i32
  }
  func.func @transform_4(%arg0: i32, %arg1: i32) -> (i32, i32) {
    %c0_i32 = arith.constant 0 : i32
    %c0_i32_0 = arith.constant 0 : i32
    %c0_i32_1 = arith.constant 0 : i32
    return %c0_i32, %c0_i32_0 : i32, i32
  }
  func.func @transform_5(%arg0: i32, %arg1: i32) -> (i32, i32) {
    %c0_i32 = arith.constant 0 : i32
    %c0_i32_0 = arith.constant 0 : i32
    %c0_i32_1 = arith.constant 0 : i32
    return %c0_i32, %c0_i32_0 : i32, i32
  }
  func.func @transform_6(%arg0: i32, %arg1: i32) -> (i32, i32) {
    %c0_i32 = arith.constant 0 : i32
    %c0_i32_0 = arith.constant 0 : i32
    %c0_i32_1 = arith.constant 0 : i32
    return %c0_i32, %c0_i32_0 : i32, i32
  }
  func.func @transform_7(%arg0: i32, %arg1: i32) -> (i32, i32, i32) {
    %c0_i32 = arith.constant 0 : i32
    %c0_i32_0 = arith.constant 0 : i32
    %c0_i32_1 = arith.constant 0 : i32
    return %arg0, %c0_i32, %c0_i32_0 : i32, i32, i32
  }
}

</mosaic_0001>

<bundles_post_ra>
// kernel: dcla_forward_pallas.1
= control target key start
LH: loop header
LB: loop body
LE: loop exit
PB: predicated region body
PF: predicated region fallthrough
CT: control target
= control target key end

     0   :  { %s4592_s0 = inlined_call_operand.vmem [shape: bf16[2,512,512], index: 0, kind: input, shape index: {}]   ;;  %s4593_s1 = inlined_call_operand.vmem [shape: f32[2,8,512], index: 1, kind: input, shape index: {}]   ;;  %s4594_s2 = inlined_call_operand.vmem [shape: f32[2,8,512], index: 2, kind: input, shape index: {}]   ;;  %s4595_s3 = inlined_call_operand.vmem [shape: bf16[16,512], index: 3, kind: input, shape index: {}]   ;;  %s4596_s4 = inlined_call_operand.vmem [shape: f32[56,512], index: 4, kind: input, shape index: {}]   ;;  %s4597_s5 = inlined_call_operand.vmem [shape: f32[8,512], index: 5, kind: input, shape index: {}]   ;;  %s4598_s6 = inlined_call_operand.vmem [shape: f32[8,128], index: 6, kind: input, shape index: {}]   ;;  %s4599_s7 = inlined_call_operand.vmem [shape: f32[2,8,512], index: 7, kind: output, shape index: {}]  }
   0x1   :  { %4623 = sst [smem:[#allocation47_spill]] %s4595_s3 }
   0x2   :  { %s3175_s24 = smov 0   ;;  %s3177_s25 = smov 0  }
   0x3   :  { %s3179_s26 = smov 0   ;;  %s3181_s27 = smov 0  }
   0x4   :  { %s3183_s28 = smov 0   ;;  %s3185_s29 = smov 0  }
   0x5   :  { %s3187_s30 = smov 0  }
   0x6 LB: > { %s26_s8 = sadd.s32 1, %s3097_s28  ;;  %s29_s9 = sadd.s32 1, %s3101_s29  ;;  %s3105_s30 = sphi %s3187_s30, %s17_s30   ;;  %s3101_s29 = sphi %s3185_s29, %s4725_s29   ;;  %s3097_s28 = sphi %s3183_s28, %s4724_s28   ;;  %s3093_s27 = sphi %s3181_s27, %s4723_s27   ;;  %s3089_s26 = sphi %s3179_s26, %s4722_s26   ;;  %s3085_s25 = sphi %s3177_s25, %s4721_s25   ;;  %s3081_s24 = sphi %s3175_s24, %s4720_s24  }
   0x7   : > { %p27_p0 = scmp.ge.s32.totalorder %s26_s8, 2  ;;  %s116_s10 = sadd.s32 1, %s3085_s25 }
   0x8   : > { %p123_p1 = scmp.ne.s32.totalorder %s3085_s25, %s3081_s24  ;;  %p124_p2 = scmp.eq.s32.totalorder %s3105_s30, 0 }
   0x9   : > { %s4727_s8 = smov (%p27_p0, %s26_s8), 0  ;;  %s4729_s9 = smov (!%p27_p0, %s29_s9), %s3101_s29 }
   0xa   : > { %4624 = sst [smem:[#allocation5_spill]] %s4727_s8  ;;  %s113_s11 = ssub.s32 %s3097_s28, %s4727_s8 }
   0xb   : > { %p125_p3 = por %p124_p2, %p123_p1  ;;  %p31_p4 = scmp.ge.s32.totalorder %s4729_s9, 2 }
   0xc   : > { %p114_p5 = scmp.eq.s32.totalorder %s113_s11, 0  ;;  %p2731_p6 = scmp.ge.s32.totalorder %s3105_s30, 4 }
   0xd   : > { %s4731_s9 = smov (%p31_p4, %s4729_s9), 0 }
   0xe   : > { %4625 = sst [smem:[#allocation6_spill]] %s4731_s9  ;;  %247 = sbr.rel (%p2731_p6) target bundleno = 32 (0x20), region = 28 }
   0xf   : > { %s3224_s12 = scalar_select %p114_p5, %s3085_s25, %s116_s10  }
  0x15   : > { %280 = sbr.rel (!%p125_p3) target bundleno = 32 (0x20), region = 44  ;;  %s282_s13 = sand.u32 (%p125_p3), 1, %s3085_s25  }
  0x16   : > { %s2825_s14 = sshll.u32 (%p125_p3), %s3097_s28, 3  ;;  %s2732_s15 = sshll.u32 (%p125_p3), %s282_s13, 4 }
  0x17   : > { %s4626_s3 = sld [smem:[#allocation47_spill]] (%p125_p3)  ;;  %s284_s19 = scalar_lea.vmem (%p125_p3), [#allocation4], %s2732_s15 }
  0x1d   : > { %s287_s18 = scalar_lea.vmem %s4626_s3, %s2825_s14 }
  0x1e   : > { %v317_v0 = vld [vmem:[%s287_s18] sm:$0xff]  ;;  %v319_v1 = vld [vmem:[%s287_s18 + $0x10] sm:$0xff] }
  0x1f   : > { %318 = vst [vmem:[%s284_s19] sm:$0xff] %v317_v0  ;;  %320 = vst [vmem:[%s284_s19 + $0x8] sm:$0xff] %v319_v1 }
  0x20 PF: > { %p2735_p7 = scmp.ge.s32.totalorder %s3105_s30, 1  ;;  %p325_p8 = scmp.lt.s32.totalorder %s3105_s30, 5 }
  0x22   : > { %p326_p9 = pnand %p2735_p7, %p325_p8 }
  0x23   : > { %s332_s20 = sand.u32 (!%p326_p9), 1, %s3081_s24   ;;  %s2737_s21 = sshll.u32 (!%p326_p9), %s3089_s26, 5 }
  0x24   : > { %329 = sbr.rel (%p326_p9) target bundleno = 1121 (0x461), region = 82  ;;  %s3236_s22 = sshll.u32 (!%p326_p9), %s332_s20, 4 }
  0x25   : > { %p384_p10 = scmp.lt.s32.totalorder (!%p326_p9), %s3093_s27, 1  ;;  %p386_p11 = scmp.lt.s32.totalorder (!%p326_p9), %s2737_s21, 63 }
  0x26   : > { %s334_s13 = scalar_lea.vmem (!%p326_p9), [#allocation4], %s3236_s22  ;;  %p2747_p12 = scmp.ne.s32.totalorder (!%p326_p9), %s3089_s26, 0 }
  0x2b   : > { %s4733_s27 = smov (!%p384_p10, %s3093_s27), 1  ;;  %s4735_s21 = smov (!%p386_p11, %s2737_s21), 63 }
  0x2c   : > { %s2739_s23 = sshll.u32 %s4733_s27, 8  ;;  %s2826_s10 = sshll.u32 %s4733_s27, 5  ;;  %v3107_v2 = vmov (!%p2747_p12), 0.0  }
  0x2d   : > { %s2738_s11 = sshll.u32 %s4735_s21, 2  ;;  %s3243_s15 = scalar_lea.vmem %s4593_s1, %s2826_s10  ;;  %414 = vst [vmem:[#allocation2] sm:$0x77] (!%p2747_p12), %v3107_v2  ;;  %415 = vst [vmem:[#allocation2 + $0x8] sm:$0x77] (!%p2747_p12), %v3107_v2 }
  0x2e   : > { %s390_s16 = sadd.s32 %s2739_s23, %s2738_s11  ;;  %s3248_s24 = scalar_lea.vmem %s4594_s2, %s2826_s10 }
  0x2f   : > { %s2740_s19 = sshll.u32 %s390_s16, 2  ;;  %s3253_s9 = scalar_lea.vmem %s4599_s7, %s2826_s10 }
  0x30   : > { %s3258_s21 = scalar_lea.vmem %s4592_s0, %s2740_s19  ;;  %413 = sbr.rel (%p2747_p12) target bundleno = 55 (0x37), region = 90 }
  0x37 PF: > { %v2913_v3 = vld [vmem:[%s3258_s21 + $0x4] ss:$16 sps:$4 sm:$0xff]   ;;  %v2915_v4 = vld [vmem:[%s3258_s21 + $0xc] ss:$16 sps:$4 sm:$0xff]   ;;  %v2917_v5 = vld [vmem:[%s3258_s21] ss:$16 sps:$4 sm:$0xff]  }
  0x38   : > { %810 = vmatprep.subr.bf16.mxu0 %v2913_v3  ;;  %v2918_v6 = vld [vmem:[%s3258_s21 + $0x8] ss:$16 sps:$4 sm:$0xff]   ;;  %851 = vmatprep.subr.bf16.mxu1 %v2915_v4  ;;  %v2919_v7 = vld [vmem:[%s3258_s21 + $0x24] ss:$16 sps:$4 sm:$0xff]   ;;  %v2921_v8 = vld [vmem:[%s3258_s21 + $0x2c] ss:$16 sps:$4 sm:$0xff]  }
  0x39   : > { %811 = vmatpush1.bf16.msra.mxu0 %v2917_v5  ;;  %852 = vmatpush1.bf16.msra.mxu1 %v2918_v6  ;;  %v2923_v9 = vld [vmem:[%s3258_s21 + $0x20] ss:$16 sps:$4 sm:$0xff]   ;;  %v2924_v10 = vld [vmem:[%s3258_s21 + $0x28] ss:$16 sps:$4 sm:$0xff]   ;;  %v2925_v11 = vld [vmem:[%s3258_s21 + $0x44] ss:$16 sps:$4 sm:$0xff]  }
  0x3a   : > { %812 = vmatprep.subr.bf16.mxu0 %v2919_v7  ;;  %853 = vmatprep.subr.bf16.mxu1 %v2921_v8  ;;  %v2927_v12 = vld [vmem:[%s3258_s21 + $0x4c] ss:$16 sps:$4 sm:$0xff]   ;;  %v2929_v13 = vld [vmem:[%s3258_s21 + $0x40] ss:$16 sps:$4 sm:$0xff]   ;;  %v2930_v14 = vld [vmem:[%s3258_s21 + $0x48] ss:$16 sps:$4 sm:$0xff]  }
  0x3b   : > { %v2931_v15 = vld [vmem:[%s3258_s21 + $0x64] ss:$16 sps:$4 sm:$0xff]   ;;  %v2933_v16 = vld [vmem:[%s3258_s21 + $0x6c] ss:$16 sps:$4 sm:$0xff]   ;;  %v2935_v17 = vld [vmem:[%s3258_s21 + $0x60] ss:$16 sps:$4 sm:$0xff]  }
  0x3c   : > { %v2936_v18 = vld [vmem:[%s3258_s21 + $0x68] ss:$16 sps:$4 sm:$0xff]   ;;  %v2937_v19 = vld [vmem:[%s3258_s21 + $0x84] ss:$16 sps:$4 sm:$0xff]   ;;  %v2939_v20 = vld [vmem:[%s3258_s21 + $0x8c] ss:$16 sps:$4 sm:$0xff]  }
  0x3d   : > { %813 = vmatpush1.bf16.msra.mxu0 %v2923_v9  ;;  %854 = vmatpush1.bf16.msra.mxu1 %v2924_v10  ;;  %v2941_v21 = vld [vmem:[%s3258_s21 + $0x80] ss:$16 sps:$4 sm:$0xff]   ;;  %v2942_v22 = vld [vmem:[%s3258_s21 + $0x88] ss:$16 sps:$4 sm:$0xff]   ;;  %v2943_v23 = vld [vmem:[%s3258_s21 + $0xa4] ss:$16 sps:$4 sm:$0xff]  }
  0x3e   : > { %814 = vmatprep.subr.bf16.mxu0 %v2925_v11  ;;  %855 = vmatprep.subr.bf16.mxu1 %v2927_v12  ;;  %v2945_v24 = vld [vmem:[%s3258_s21 + $0xac] ss:$16 sps:$4 sm:$0xff]   ;;  %v2947_v25 = vld [vmem:[%s3258_s21 + $0xa0] ss:$16 sps:$4 sm:$0xff]   ;;  %v2948_v26 = vld [vmem:[%s3258_s21 + $0xa8] ss:$16 sps:$4 sm:$0xff]  }
  0x3f   : > { %v2949_v27 = vld [vmem:[%s3258_s21 + $0xc4] ss:$16 sps:$4 sm:$0xff]   ;;  %v2951_v28 = vld [vmem:[%s3258_s21 + $0xcc] ss:$16 sps:$4 sm:$0xff]   ;;  %v2953_v29 = vld [vmem:[%s3258_s21 + $0xc0] ss:$16 sps:$4 sm:$0xff]  }
  0x40   : > { %v2954_v30 = vld [vmem:[%s3258_s21 + $0xc8] ss:$16 sps:$4 sm:$0xff]   ;;  %v2955_v31 = vld [vmem:[%s3258_s21 + $0xe4] ss:$16 sps:$4 sm:$0xff]   ;;  %v2957_v32 = vld [vmem:[%s3258_s21 + $0xec] ss:$16 sps:$4 sm:$0xff]  }
  0x41   : > { %815 = vmatpush1.bf16.msra.mxu0 %v2929_v13  ;;  %856 = vmatpush1.bf16.msra.mxu1 %v2930_v14  ;;  %v2959_v33 = vld [vmem:[%s3258_s21 + $0xe0] ss:$16 sps:$4 sm:$0xff]   ;;  %v2960_v34 = vld [vmem:[%s3258_s21 + $0xe8] ss:$16 sps:$4 sm:$0xff]   ;;  %v2961_v35 = vld [vmem:[%s3258_s21 + $0x104] ss:$16 sps:$4 sm:$0xff]  }
  0x42   : > { %816 = vmatprep.subr.bf16.mxu0 %v2931_v15  ;;  %857 = vmatprep.subr.bf16.mxu1 %v2933_v16  ;;  %v2963_v36 = vld [vmem:[%s3258_s21 + $0x10c] ss:$16 sps:$4 sm:$0xff]   ;;  %v2965_v37 = vld [vmem:[%s3258_s21 + $0x100] ss:$16 sps:$4 sm:$0xff]   ;;  %v2966_v38 = vld [vmem:[%s3258_s21 + $0x108] ss:$16 sps:$4 sm:$0xff]  }
  0x43   : > { %v2967_v39 = vld [vmem:[%s3258_s21 + $0x124] ss:$16 sps:$4 sm:$0xff]   ;;  %v2969_v40 = vld [vmem:[%s3258_s21 + $0x12c] ss:$16 sps:$4 sm:$0xff]   ;;  %v2971_v41 = vld [vmem:[%s3258_s21 + $0x120] ss:$16 sps:$4 sm:$0xff]  }
  0x44   : > { %v2972_v42 = vld [vmem:[%s3258_s21 + $0x128] ss:$16 sps:$4 sm:$0xff]   ;;  %v2973_v43 = vld [vmem:[%s3258_s21 + $0x144] ss:$16 sps:$4 sm:$0xff]   ;;  %v2975_v44 = vld [vmem:[%s3258_s21 + $0x14c] ss:$16 sps:$4 sm:$0xff]  }
  0x45   : > { %817 = vmatpush1.bf16.msra.mxu0 %v2935_v17  ;;  %858 = vmatpush1.bf16.msra.mxu1 %v2936_v18  ;;  %v2977_v45 = vld [vmem:[%s3258_s21 + $0x140] ss:$16 sps:$4 sm:$0xff]   ;;  %v2978_v46 = vld [vmem:[%s3258_s21 + $0x148] ss:$16 sps:$4 sm:$0xff]   ;;  %v2979_v47 = vld [vmem:[%s3258_s21 + $0x164] ss:$16 sps:$4 sm:$0xff]  }
  0x46   : > { %818 = vmatprep.subr.bf16.mxu0 %v2937_v19  ;;  %859 = vmatprep.subr.bf16.mxu1 %v2939_v20  ;;  %v2981_v48 = vld [vmem:[%s3258_s21 + $0x16c] ss:$16 sps:$4 sm:$0xff]   ;;  %v2983_v51 = vld [vmem:[%s3258_s21 + $0x160] ss:$16 sps:$4 sm:$0xff]   ;;  %v2984_v52 = vld [vmem:[%s3258_s21 + $0x168] ss:$16 sps:$4 sm:$0xff]  }
  0x47   : > { %v418_v49 = vld [vmem:[%s334_s13] sm:$0x33]  ;;  %v2985_v53 = vld [vmem:[%s3258_s21 + $0x184] ss:$16 sps:$4 sm:$0xff]   ;;  %v2990_v56 = vld [vmem:[%s3258_s21 + $0x188] ss:$16 sps:$4 sm:$0xff]  }
  0x48   : > { %v2749_v50 = vcombine.high %v418_v49, %v418_v49  ;;  %v2987_v54 = vld [vmem:[%s3258_s21 + $0x18c] ss:$16 sps:$4 sm:$0xff]   ;;  %v2989_v55 = vld [vmem:[%s3258_s21 + $0x180] ss:$16 sps:$4 sm:$0xff]   ;;  %v2991_v57 = vld [vmem:[%s3258_s21 + $0x1a4] ss:$16 sps:$4 sm:$0xff]   ;;  %v2748_v5 = vcombine.low %v418_v49, %v418_v49 }
  0x49   : > { %819 = vmatpush1.bf16.msra.mxu0 %v2941_v21  ;;  %860 = vmatpush1.bf16.msra.mxu1 %v2942_v22  ;;  %v2993_v58 = vld [vmem:[%s3258_s21 + $0x1ac] ss:$16 sps:$4 sm:$0xff]   ;;  %v2995_v59 = vld [vmem:[%s3258_s21 + $0x1a0] ss:$16 sps:$4 sm:$0xff]   ;;  %v2996_v60 = vld [vmem:[%s3258_s21 + $0x1a8] ss:$16 sps:$4 sm:$0xff]  }
  0x4a   : > { %820 = vmatprep.subr.bf16.mxu0 %v2943_v23  ;;  %861 = vmatprep.subr.bf16.mxu1 %v2945_v24  ;;  %v2997_v61 = vld [vmem:[%s3258_s21 + $0x1c4] ss:$16 sps:$4 sm:$0xff]   ;;  %v2999_v62 = vld [vmem:[%s3258_s21 + $0x1cc] ss:$16 sps:$4 sm:$0xff]   ;;  %v3001_v63 = vld [vmem:[%s3258_s21 + $0x1c0] ss:$16 sps:$4 sm:$0xff]  }
  0x4b   : > { %842 = vmatprep.mubr.bf16.mxu0 %v2749_v50  ;;  %883 = vmatprep.mubr.bf16.mxu1 %v2749_v50  ;;  %v3002_v0 = vld [vmem:[%s3258_s21 + $0x1c8] ss:$16 sps:$4 sm:$0xff]   ;;  %v3003_v1 = vld [vmem:[%s3258_s21 + $0x1e4] ss:$16 sps:$4 sm:$0xff]   ;;  %v3005_v2 = vld [vmem:[%s3258_s21 + $0x1ec] ss:$16 sps:$4 sm:$0xff]  }
  0x4c   : > { %v3007_v3 = vld [vmem:[%s3258_s21 + $0x1e0] ss:$16 sps:$4 sm:$0xff]   ;;  %v3008_v4 = vld [vmem:[%s3258_s21 + $0x1e8] ss:$16 sps:$4 sm:$0xff]   ;;  %p2814_p13 = scmp.ne.s32.totalorder %s3089_s26, 1 }
  0x4d   : > { %821 = vmatpush1.bf16.msra.mxu0 %v2947_v25  ;;  %862 = vmatpush1.bf16.msra.mxu1 %v2948_v26  ;;  %v416_v8 = vld [vmem:[#allocation2] sm:$0x77]  ;;  %v417_v10 = vld [vmem:[#allocation2 + $0x8] sm:$0x77] }
  0x4e   : > { %822 = vmatprep.subr.bf16.mxu0 %v2949_v27  ;;  %863 = vmatprep.subr.bf16.mxu1 %v2951_v28 }
  0x51   : > { %823 = vmatpush1.bf16.msra.mxu0 %v2953_v29  ;;  %864 = vmatpush1.bf16.msra.mxu1 %v2954_v30 }
  0x52   : > { %824 = vmatprep.subr.bf16.mxu0 %v2955_v31  ;;  %865 = vmatprep.subr.bf16.mxu1 %v2957_v32 }
  0x55   : > { %825 = vmatpush1.bf16.msra.mxu0 %v2959_v33  ;;  %866 = vmatpush1.bf16.msra.mxu1 %v2960_v34 }
  0x56   : > { %826 = vmatprep.subr.bf16.mxu0 %v2961_v35  ;;  %867 = vmatprep.subr.bf16.mxu1 %v2963_v36 }
  0x59   : > { %827 = vmatpush1.bf16.msra.mxu0 %v2965_v37  ;;  %868 = vmatpush1.bf16.msra.mxu1 %v2966_v38 }
  0x5a   : > { %828 = vmatprep.subr.bf16.mxu0 %v2967_v39  ;;  %869 = vmatprep.subr.bf16.mxu1 %v2969_v40 }
  0x5d   : > { %829 = vmatpush1.bf16.msra.mxu0 %v2971_v41  ;;  %870 = vmatpush1.bf16.msra.mxu1 %v2972_v42 }
  0x5e   : > { %830 = vmatprep.subr.bf16.mxu0 %v2973_v43  ;;  %871 = vmatprep.subr.bf16.mxu1 %v2975_v44 }
  0x61   : > { %831 = vmatpush1.bf16.msra.mxu0 %v2977_v45  ;;  %872 = vmatpush1.bf16.msra.mxu1 %v2978_v46 }
  0x62   : > { %832 = vmatprep.subr.bf16.mxu0 %v2979_v47  ;;  %873 = vmatprep.subr.bf16.mxu1 %v2981_v48 }
  0x65   : > { %833 = vmatpush1.bf16.msra.mxu0 %v2983_v51  ;;  %874 = vmatpush1.bf16.msra.mxu1 %v2984_v52 }
  0x66   : > { %834 = vmatprep.subr.bf16.mxu0 %v2985_v53  ;;  %875 = vmatprep.subr.bf16.mxu1 %v2987_v54 }
  0x69   : > { %835 = vmatpush1.bf16.msra.mxu0 %v2989_v55  ;;  %876 = vmatpush1.bf16.msra.mxu1 %v2990_v56 }
  0x6a   : > { %836 = vmatprep.subr.bf16.mxu0 %v2991_v57  ;;  %877 = vmatprep.subr.bf16.mxu1 %v2993_v58 }
  0x6d   : > { %837 = vmatpush1.bf16.msra.mxu0 %v2995_v59  ;;  %878 = vmatpush1.bf16.msra.mxu1 %v2996_v60 }
  0x6e   : > { %838 = vmatprep.subr.bf16.mxu0 %v2997_v61  ;;  %879 = vmatprep.subr.bf16.mxu1 %v2999_v62 }
  0x71   : > { %839 = vmatpush1.bf16.msra.mxu0 %v3001_v63  ;;  %880 = vmatpush1.bf16.msra.mxu1 %v3002_v0 }
  0x72   : > { %840 = vmatprep.subr.bf16.mxu0 %v3003_v1  ;;  %881 = vmatprep.subr.bf16.mxu1 %v3005_v2 }
  0x75   : > { %841 = vmatpush1.bf16.msra.mxu0 %v3007_v3  ;;  %882 = vmatpush1.bf16.msra.mxu1 %v3008_v4 }
  0x78   : > { %843 = vmatmul.mubr.bf16.vlgmr.msra.gmra.mrb[0].mxu0 %v2748_v5  ;;  %884 = vmatmul.mubr.bf16.vlgmr.msra.gmra.mrb[0].mxu1 %v2748_v5 }
 0x14b   : > { %v844_v6 = vpop.f32.mrb[0].mxu0  ;;  %v885_v7 = vpop.f32.mrb[0].mxu1  ;;  %907 = sbr.rel (%p2814_p13) target bundleno = 1121 (0x461), region = 94 }
 0x14c   : > { %v846_v9 = vpop.f32.mrb[1].mxu0  ;;  %v887_v11 = vpop.f32.mrb[1].mxu1 }
 0x14d   : > { %v896_v12 = vcombine.low %v844_v6, %v846_v9  ;;  %v897_v13 = vcombine.low %v885_v7, %v887_v11  ;;  %v848_v14 = vpop.f32.mrb[2].mxu0  ;;  %v889_v15 = vpop.f32.mrb[2].mxu1 }
 0x14e   : > { %v849_v16 = vpop.f32.mrb[3].mxu0  ;;  %v890_v17 = vpop.f32.mrb[3].mxu1 }
 0x14f   : > { %v900_v18 = vadd.f32 %v896_v12, %v416_v8  ;;  %v901_v19 = vadd.f32 %v897_v13, %v417_v10 }
 0x151   : > { %902 = vst [vmem:[#allocation2] sm:$0x77] %v900_v18  ;;  %903 = vst [vmem:[#allocation2 + $0x8] sm:$0x77] %v901_v19 }
 0x152   : > { %v976_v20 = vld [vmem:[%s3243_s15 + $0x8] sm:$0xff]  ;;  %v978_v21 = vld [vmem:[%s3243_s15 + $0x18] sm:$0xff]  ;;  %v975_v22 = vld [vmem:[%s3243_s15] sm:$0xff]  ;;  %vm922_vm0 = vcmask 1041408   ;;  %vm923_vm1 = vcmask 1045508   ;;  %v3108_v35 = vmov 0.0   ;;  %v1148_v60 = vlaneseq }
 0x153   : > { %987 = vmatprep.subr.mxu0 %v976_v20  ;;  %1058 = vmatprep.subr.mxu1 %v978_v21  ;;  %v3019_v23 = vld [vmem:[%s4597_s5] ss:$8 sps:$4 sm:$0xcc]   ;;  %v3021_v24 = vld [vmem:[%s4597_s5 + $0x4] ss:$8 sps:$4 sm:$0x11]   ;;  %vm3345_vm2 = vmor %vm922_vm0, %vm923_vm1 }
 0x154   : > { %988 = vmatpush1.msra.mxu0 %v975_v22  ;;  %v3022_v25 = vld [vmem:[%s4597_s5 + $0x10] ss:$8 sps:$4 sm:$0xcc]   ;;  %v3024_v26 = vld [vmem:[%s4597_s5 + $0x14] ss:$8 sps:$4 sm:$0x11]   ;;  %1051 = vmatprep.mubr.f32.mxu0 %v3108_v35 }
 0x155   : > { %v2815_v29 = vrot.slane %v3019_v23, 10  ;;  %v927_v30 = vrot.slane %v3021_v24, 6  ;;  %v977_v31 = vld [vmem:[%s3243_s15 + $0x10] sm:$0xff]  ;;  %v2816_v33 = vrot.slane %v3022_v25, 10  ;;  %v931_v34 = vrot.slane %v3024_v26, 6  ;;  %1137 = vst [vmem:[#allocation3] sm:$0xff] %v3108_v35  ;;  %1122 = vmatprep.mubr.f32.mxu1 %v3108_v35 }
 0x156   : > { %1138 = vst [vmem:[#allocation3 + $0x8] sm:$0xf] %v3108_v35  ;;  %1059 = vmatpush1.msra.mxu1 %v977_v31  ;;  %v974_v36 = vld [vmem:[%s4598_s6 + $0x1] sm:$0x1]  ;;  %vm984_vm3 = vcmask 64512   ;;  %vm945_vm4 = vcmask 1042432  }
 0x157   : > { %v928_v37 = vsel %vm3345_vm2, %v2815_v29, %v927_v30  ;;  %v932_v38 = vsel %vm3345_vm2, %v2816_v33, %v931_v34  ;;  %2817 = vmatmul.mubr.msk.f32.vlgmr.msra.gmra.mrb[0].mxu0 %vm984_vm3, %v974_v36  ;;  %2818 = vmatmul.mubr.msk.f32.vlgmr.msra.gmra.mrb[0].mxu1 %vm984_vm3, %v974_v36  ;;  %v3109_v42 = vmov 8   ;;  %v3110_v58 = vmov 1966171168   ;;  %s3112_s15 = smov 120   ;;  %s3113_s18 = smov 127  }
 0x158   : > { %v908_v28 = vld [vmem:[#allocation2] sm:$0x77]  ;;  %v909_v32 = vld [vmem:[#allocation2 + $0x8] sm:$0x77]  ;;  %3011 = vset.pattern.permute.xlu0 %v3109_v42  ;;  %v1146_v59 = vunpack.c.l.s4 %v3110_v58  ;;  %v3359_v6 = vshrl.u32 %v1148_v60, 7  ;;  %vm3362_vm5 = vcmp.lt.s32.totalorder %v1148_v60, 512 }
 0x159   : > { %v935_v39 = vadd.f32 %v928_v37, %v908_v28  ;;  %v936_v40 = vadd.f32 %v932_v38, %v909_v32  ;;  %981 = vperm.xlu0 %3011, %v974_v36   ;;  %v3111_v23 = vmov 1983009808   ;;  %s3114_s19 = smov 121   ;;  %s3115_s20 = smov 65   ;;  %vm1675_vm6 = vcmask 72704  }
 0x15a   : > { %v1147_v5 = vunpack.c.0.s8 %v1146_v59  ;;  %4629 = vst [vmem:[#allocation7_spill] sm:$0xff] %v3359_v6  ;;  %v1210_v24 = vunpack.c.l.s4 %v3111_v23  ;;  %s3116_s27 = smov 73   ;;  %s3117_s21 = smov 64   ;;  %vm1970_vm7 = vcmask 990208   ;;  %vm1350_vm8 = vcmask 588800  }
 0x15b   : > { %v937_v41 = vmax.f32 %v935_v39, 0.0  ;;  %v938_v43 = vmax.f32 %v936_v40, 0.0  ;;  %s3118_s13 = smov 72   ;;  %s3119_s3 = smov 56   ;;  %vm1515_vm9 = vcmask 515072   ;;  %vm2015_vm10 = vcmask 982016  }
 0x15c   : > { %v1150_v14 = vsub.s32 %v1147_v5, %v3359_v6  ;;  %v1211_v25 = vunpack.c.0.s8 %v1210_v24  ;;  %s3120_s8 = smov 71   ;;  %s3121_s22 = smov 55   ;;  %vm1396_vm11 = vcmask 580608   ;;  %vm1558_vm12 = vcmask 465920  }
 0x15d   : > { %v941_v44 = vcombine.high %v937_v41, %v937_v41  ;;  %v946_v45 = vsel %vm945_vm4, %v937_v41, 0.0  ;;  %v942_v46 = vcombine.high %v938_v43, %v938_v43  ;;  %v960_v48 = vsel %vm945_vm4, %v938_v43, 0.0  ;;  %v1871_v27 = vld [vmem:[#allocation3 + $0xa] sm:$0x3]  ;;  %s3122_s23 = smov 63   ;;  %s3123_s26 = smov 57  }
 0x15e   : > { %v947_v47 = vrot.slane %v946_v45, 4  ;;  %v961_v50 = vrot.slane %v960_v48, 4  ;;  %v3369_v26 = vsub.s32 %v1211_v25, %v3359_v6  ;;  %v1951_v29 = vcombine.low %v1871_v27, %v1871_v27  ;;  %s3124_s10 = smov 7   ;;  %s3125_s11 = smov 9  }
 0x15f   : > { %v953_v49 = vsel %vm945_vm4, %v941_v44, 0.0  ;;  %v967_v53 = vsel %vm945_vm4, %v942_v46, 0.0  ;;  %s3126_s14 = smov 1   ;;  %s3127_s16 = smov 8   ;;  %vm1302_vm13 = vcmask 596992   ;;  %vm1441_vm14 = vcmask 531456  }
 0x160   : > { %v948_v51 = vadd.f32 %v947_v47, %v946_v45  ;;  %v954_v52 = vrot.slane %v953_v49, 4  ;;  %v962_v54 = vadd.f32 %v961_v50, %v960_v48  ;;  %v968_v55 = vrot.slane %v967_v53, 4  ;;  %s3128_s17 = smov 119  }
 0x161   : > { %v3372_v28 = vrot.slane %v1871_v27, %v3369_v26  ;;  %v3375_v30 = vrot.slane %v1951_v29, %v3369_v26  ;;  %vm1484_vm15 = vcmask 523264   ;;  %vm1601_vm1 = vcmask 457728  }
 0x162   : > { %v949_v56 = vrot.slane %v948_v51, 2  ;;  %v955_v57 = vadd.f32 %v954_v52, %v953_v49  ;;  %v963_v61 = vrot.slane %v962_v54, 2  ;;  %v969_v62 = vadd.f32 %v968_v55, %v967_v53 }
 0x163   : > { %4632 = vst [vmem:[#allocation8_spill] sm:$0xff] %v3375_v30  ;;  %2013 = vrot.lane.b32.xlu1 %v3372_v28, %s3112_s15  ;;  %v3381_v31 = vcombine.low %v3372_v28, %v3372_v28  ;;  %v3385_v32 = vcombine.low %v3375_v30, %v3375_v30  ;;  %vm1644_vm2 = vcmask 449536   ;;  %vm1760_vm4 = vcmask 56320  }
 0x164   : > { %v950_v63 = vadd.f32 %v949_v56, %v948_v51  ;;  %v956_v0 = vrot.slane %v955_v57, 2  ;;  %v964_v1 = vadd.f32 %v963_v61, %v962_v54  ;;  %v970_v2 = vrot.slane %v969_v62, 2 }
 0x165   : > { %4633 = vst [vmem:[#allocation9_spill] sm:$0xff] %v3381_v31  ;;  %1968 = vrot.lane.b32.xlu0 %v3385_v32, %s3114_s19 }
 0x166   : > { %v951_v3 = vrot.slane %v950_v63, 1  ;;  %v957_v4 = vadd.f32 %v956_v0, %v955_v57  ;;  %v965_v7 = vrot.slane %v964_v1, 1  ;;  %v971_v8 = vadd.f32 %v970_v2, %v969_v62 }
 0x167   : > { %1907 = vrot.lane.b32.xlu1 %v3381_v31, %s3113_s18 }
 0x168   : > { %v952_v9 = vadd.f32 %v951_v3, %v950_v63  ;;  %v958_v10 = vrot.slane %v957_v4, 1  ;;  %v966_v11 = vadd.f32 %v965_v7, %v964_v1  ;;  %v972_v12 = vrot.slane %v971_v8, 1 }
 0x16a   : > { %v959_v13 = vadd.f32 %v958_v10, %v957_v4  ;;  %v973_v15 = vadd.f32 %v972_v12, %v971_v8 }
 0x16c   : > { %v1143_v16 = vcombine.low %v952_v9, %v959_v13  ;;  %v1144_v17 = vcombine.low %v966_v11, %v973_v15 }
 0x16e   : > { %v1151_v18 = vrot.slane %v1143_v16, %v1150_v14  ;;  %v1158_v19 = vrot.slane %v1144_v17, %v1150_v14 }
 0x170   : > { %v1159_v20 = vcombine.low %v1151_v18, %v1158_v19 }
 0x172   : > { %v1166_v22 = vrot.slane %v1159_v20, %v1150_v14 }
 0x174   : > { %1173 = vst.msk [vmem:[#allocation3 + $0x2] ss:$2 sm:$0xf] %vm3362_vm5, %v1166_v22 }
 0x1d5   : > { %v3496_v12 = vpop.permute.xlu1 %2013 }
 0x1d6   : > { %4635 = vst [vmem:[#allocation11_spill] sm:$0xff] %v3496_v12 }
 0x1d8   : > { %v982_v33 = vpop.permute.xlu0 %981 }
 0x1d9   : > { %v3510_v15 = vpop.permute.xlu1 %1907 }
 0x1da   : > { %4636 = vst [vmem:[#allocation12_spill] sm:$0xff] %v3510_v15 }
 0x1dc   : > { %v3512_v16 = vpop.permute.xlu0 %1968 }
 0x1dd   : > { %4637 = vst [vmem:[#allocation13_spill] sm:$0xff] %v3512_v16 }
 0x22a   : > { %v1053_v34 = vpop.f32.mrb[0].mxu0  ;;  %v1124_v35 = vpop.f32.mrb[0].mxu1 }
 0x22b   : > { %v1054_v36 = vadd.f32 %v1053_v34, %v982_v33  ;;  %v1125_v37 = vadd.f32 %v1124_v35, %v982_v33  ;;  %v1055_v38 = vpop.f32.mrb[1].mxu0  ;;  %v1126_v39 = vpop.f32.mrb[1].mxu1 }
 0x22c   : > { %v1056_v40 = vadd.f32 %v1055_v38, %v982_v33  ;;  %v1127_v41 = vadd.f32 %v1126_v39, %v982_v33 }
 0x22d   : > { %v1129_v42 = vmax.f32 %v1054_v36, 0.0  ;;  %v1131_v43 = vmax.f32 %v1125_v37, 0.0 }
 0x22e   : > { %v1130_v44 = vmax.f32 %v1056_v40, 0.0  ;;  %v1132_v45 = vmax.f32 %v1127_v41, 0.0 }
 0x22f   : > { %v1133_v46 = vmin.f32 %v1129_v42, 6.0  ;;  %v1135_v47 = vmin.f32 %v1131_v43, 6.0 }
 0x230   : > { %v1134_v48 = vmin.f32 %v1130_v44, 6.0  ;;  %v1136_v49 = vmin.f32 %v1132_v45, 6.0 }
 0x232   : > { %v1178_v50 = vcombine.low %v1133_v46, %v1134_v48  ;;  %v1179_v51 = vcombine.low %v1135_v47, %v1136_v49 }
 0x234   : > { %v1186_v52 = vrot.slane %v1178_v50, %v1150_v14  ;;  %v1193_v53 = vrot.slane %v1179_v51, %v1150_v14 }
 0x236   : > { %v1194_v54 = vcombine.low %v1186_v52, %v1193_v53 }
 0x238   : > { %v1201_v55 = vrot.slane %v1194_v54, %v1150_v14 }
 0x23a   : > { %1204 = vst.msk [vmem:[#allocation3 + $0x3] ss:$2 sm:$0xf] %vm3362_vm5, %v1201_v55  ;;  %vm1803_vm5 = vcmask 7168  }
 0x241   : > { %v1264_v56 = vld [vmem:[#allocation3] sm:$0xff]  ;;  %v1265_v58 = vld [vmem:[#allocation3 + $0x8] sm:$0x3] }
 0x242   : > { %v1275_v57 = vrot.slane %v1264_v56, %v3369_v26  ;;  %v1291_v59 = vrot.slane %v1265_v58, %v3369_v26  ;;  %v3409_v60 = vld [vmem:[#allocation3 + $0x2] sm:$0xff]  ;;  %v1332_v63 = vcombine.low %v1265_v58, %v1265_v58  ;;  %v1268_v0 = vcombine.high %v1264_v56, %v1264_v56 }
 0x243   : > { %v3415_v61 = vrot.slane %v3409_v60, %v3369_v26  ;;  %v1323_v3 = vcombine.low %v1264_v56, %v1264_v56  ;;  %v1874_v8 = vcombine.high %v3409_v60, %v3409_v60  ;;  %v1942_v13 = vcombine.low %v3409_v60, %v3409_v60 }
 0x244   : > { %1437 = vrot.lane.b32.xlu0 %v1275_v57, %s3115_s20  ;;  %1292 = vrot.lane.b32.xlu1 %v1275_v57, %s3116_s27  ;;  %v1283_v62 = vcombine.high %v1275_v57, %v1275_v57  ;;  %v3428_v1 = vrot.slane %v1332_v63, %v3369_v26  ;;  %v3431_v2 = vrot.slane %v1268_v0, %v3369_v26 }
 0x245   : > { %v3438_v4 = vrot.slane %v1323_v3, %v3369_v26  ;;  %v1383_v5 = vcombine.low %v1275_v57, %v1275_v57  ;;  %v1385_v7 = vcombine.low %v1291_v59, %v1291_v59  ;;  %v3478_v9 = vrot.slane %v1874_v8, %v3369_v26 }
 0x246   : > { %v3486_v10 = vcombine.low %v3415_v61, %v3415_v61  ;;  %v3494_v11 = vcombine.high %v3415_v61, %v3415_v61  ;;  %v3505_v14 = vrot.slane %v1942_v13, %v3369_v26  ;;  %v1384_v20 = vcombine.low %v3431_v2, %v3431_v2 }
 0x247   : > { %v1331_v17 = vcombine.high %v3438_v4, %v3438_v4  ;;  %v3559_v35 = vcombine.high %v3478_v9, %v3478_v9  ;;  %v1284_v36 = vcombine.high %v3431_v2, %v3431_v2  ;;  %v1206_v41 = vmul.f32 %v3409_v60, %v3409_v60 }
 0x248   : > { %1474 = vrot.lane.b32.xlu0 %v1275_v57, %s3117_s21  ;;  %1300 = vrot.lane.b32.xlu1 %v1291_v59, %s3116_s27  ;;  %4634 = vst [vmem:[#allocation10_spill] sm:$0xff] %v3486_v10  ;;  %v3547_v29 = vcombine.low %v3505_v14, %v3505_v14  ;;  %v1429_v44 = vcombine.low %v3438_v4, %v3438_v4 }
 0x249   : > { %v1215_v45 = vrot.slane %v1206_v41, %v3369_v26  ;;  %v1430_v48 = vcombine.low %v3428_v1, %v3428_v1  ;;  %v1208_v50 = vcombine.high %v1206_v41, %v1206_v41 }
 0x24b   : > { %v1223_v49 = vcombine.high %v1215_v45, %v1215_v45  ;;  %v1222_v54 = vrot.slane %v1208_v50, %v3369_v26  ;;  %v1229_v55 = vsel %vm922_vm0, %v1215_v45, 0.0  ;;  %v3639_v45 = vcombine.low %v3478_v9, %v3478_v9 }
 0x24c   : > { %1482 = vrot.lane.b32.xlu0 %v1291_v59, %s3117_s21  ;;  %1344 = vrot.lane.b32.xlu1 %v1275_v57, %s3118_s13 }
 0x24d   : > { %v1230_v53 = vsel %vm922_vm0, %v1223_v49, 0.0  ;;  %v1232_v60 = vsel %vm922_vm0, %v1222_v54, 0.0  ;;  %4648 = vst [vmem:[#allocation24_spill] sm:$0xff] %v3639_v45  ;;  %v3649_v49 = vcombine.high %v3505_v14, %v3505_v14 }
 0x24e   : > { %v1231_v56 = vadd.f32 %v1230_v53, %v1229_v55 }
 0x250   : > { %1597 = vrot.lane.b32.xlu0 %v1275_v57, %s3119_s3  ;;  %1388 = vrot.lane.b32.xlu1 %v1275_v57, %s3120_s8 }
 0x254   : > { %1634 = vrot.lane.b32.xlu0 %v1275_v57, %s3121_s22  ;;  %1509 = vrot.lane.b32.xlu1 %v1275_v57, %s3122_s23 }
 0x258   : > { %1642 = vrot.lane.b32.xlu0 %v1291_v59, %s3121_s22  ;;  %1550 = vrot.lane.b32.xlu1 %v1275_v57, %s3123_s26 }
 0x25c   : > { %1756 = vrot.lane.b32.xlu0 %v1275_v57, %s3124_s10  ;;  %1669 = vrot.lane.b32.xlu1 %v1275_v57, %s3125_s11 }
 0x260   : > { %1793 = vrot.lane.b32.xlu0 %v1275_v57, %s3126_s14  ;;  %1710 = vrot.lane.b32.xlu1 %v1275_v57, %s3127_s16 }
 0x264   : > { %1801 = vrot.lane.b32.xlu0 %v1291_v59, %s3126_s14  ;;  %1966 = vrot.lane.b32.xlu1 %v3415_v61, %s3114_s19  ;;  %v1224_v59 = vcombine.high %v1222_v54, %v1222_v54 }
 0x266   : > { %v1234_v26 = vsel %vm922_vm0, %v1224_v59, 0.0 }
 0x268   : > { %1901 = vrot.lane.b32.xlu0 %v3415_v61, %s3113_s18  ;;  %2005 = vrot.lane.b32.xlu1 %v3415_v61, %s3112_s15 }
 0x26c   : > { %2041 = vrot.lane.b32.xlu0 %v3415_v61, %s3128_s17  ;;  %1294 = vrot.lane.b32.xlu1 %v1283_v62, %s3116_s27 }
 0x270   : > { %1348 = vrot.lane.b32.xlu0 %v3428_v1, %s3118_s13  ;;  %1296 = vrot.lane.b32.xlu1 %v3431_v2, %s3116_s27 }
 0x274   : > { %1433 = vrot.lane.b32.xlu0 %v3438_v4, %s3115_s20  ;;  %1340 = vrot.lane.b32.xlu1 %v3438_v4, %s3118_s13 }
 0x278   : > { %1478 = vrot.lane.b32.xlu0 %v3431_v2, %s3117_s21  ;;  %1346 = vrot.lane.b32.xlu1 %v1283_v62, %s3118_s13 }
 0x27c   : > { %1511 = vrot.lane.b32.xlu0 %v1283_v62, %s3122_s23  ;;  %1386 = vrot.lane.b32.xlu1 %v1383_v5, %s3120_s8 }
 0x280   : > { %1548 = vrot.lane.b32.xlu0 %v1383_v5, %s3123_s26  ;;  %1392 = vrot.lane.b32.xlu1 %v3431_v2, %s3120_s8 }
 0x284   : > { %1556 = vrot.lane.b32.xlu0 %v1385_v7, %s3123_s26  ;;  %1394 = vrot.lane.b32.xlu1 %v1385_v7, %s3120_s8 }
 0x288   : > { %1593 = vrot.lane.b32.xlu0 %v3438_v4, %s3119_s3  ;;  %1435 = vrot.lane.b32.xlu1 %v1383_v5, %s3115_s20 }
 0x28c   : > { %1638 = vrot.lane.b32.xlu0 %v3431_v2, %s3121_s22  ;;  %1476 = vrot.lane.b32.xlu1 %v1283_v62, %s3117_s21 }
 0x290   : > { %1671 = vrot.lane.b32.xlu0 %v1283_v62, %s3125_s11  ;;  %1505 = vrot.lane.b32.xlu1 %v3438_v4, %s3122_s23 }
 0x294   : > { %1708 = vrot.lane.b32.xlu0 %v1383_v5, %s3127_s16  ;;  %1513 = vrot.lane.b32.xlu1 %v3428_v1, %s3122_s23 }
 0x298   : > { %1716 = vrot.lane.b32.xlu0 %v1385_v7, %s3127_s16  ;;  %1554 = vrot.lane.b32.xlu1 %v3431_v2, %s3123_s26 }
 0x29c   : > { %1752 = vrot.lane.b32.xlu0 %v3438_v4, %s3124_s10  ;;  %1595 = vrot.lane.b32.xlu1 %v1383_v5, %s3119_s3 }
 0x2a0   : > { %1797 = vrot.lane.b32.xlu0 %v3431_v2, %s3126_s14  ;;  %1636 = vrot.lane.b32.xlu1 %v1283_v62, %s3121_s22 }
 0x2a4   : > { %1905 = vrot.lane.b32.xlu0 %v3478_v9, %s3113_s18  ;;  %1665 = vrot.lane.b32.xlu1 %v3438_v4, %s3125_s11 }
 0x2a8   : > { %1964 = vrot.lane.b32.xlu0 %v3486_v10, %s3114_s19  ;;  %1673 = vrot.lane.b32.xlu1 %v3428_v1, %s3125_s11 }
 0x2ac   : > { %2007 = vrot.lane.b32.xlu0 %v3494_v11, %s3112_s15  ;;  %1714 = vrot.lane.b32.xlu1 %v3431_v2, %s3127_s16 }
 0x2b0   : > { %2037 = vrot.lane.b32.xlu0 %v3505_v14, %s3128_s17  ;;  %1754 = vrot.lane.b32.xlu1 %v1383_v5, %s3124_s10 }
 0x2b4   : > { %1507 = vrot.lane.b32.xlu0 %v1331_v17, %s3122_s23  ;;  %1795 = vrot.lane.b32.xlu1 %v1283_v62, %s3126_s14  ;;  %v1233_v62 = vadd.f32 %v1232_v60, %v1231_v56 }
 0x2b6   : > { %v3518_v18 = vpop.permute.xlu0 %1437  ;;  %v3520_v19 = vpop.permute.xlu1 %1292  ;;  %v1235_v1 = vadd.f32 %v1234_v26, %v1233_v62 }
 0x2b8   : > { %1899 = vrot.lane.b32.xlu1 %v3486_v10, %s3113_s18  ;;  %1552 = vrot.lane.b32.xlu0 %v1384_v20, %s3123_s26 }
 0x2ba   : > { %v3527_v21 = vpop.permute.xlu0 %1474  ;;  %v3529_v22 = vpop.permute.xlu1 %1300 }
 0x2bc   : > { %1962 = vrot.lane.b32.xlu1 %v3505_v14, %s3114_s19  ;;  %1667 = vrot.lane.b32.xlu0 %v1331_v17, %s3125_s11 }
 0x2be   : > { %v3534_v23 = vpop.permute.xlu0 %1482  ;;  %v3536_v24 = vpop.permute.xlu1 %1344 }
 0x2bf   : > { %4638 = vst [vmem:[#allocation14_spill] sm:$0xff] %v3534_v23 }
 0x2c0   : > { %2009 = vrot.lane.b32.xlu1 %v3478_v9, %s3112_s15  ;;  %1712 = vrot.lane.b32.xlu0 %v1384_v20, %s3127_s16 }
 0x2c2   : > { %v3541_v25 = vpop.permute.xlu0 %1597  ;;  %v3543_v27 = vpop.permute.xlu1 %1388 }
 0x2c4   : > { %2043 = vrot.lane.b32.xlu1 %v3494_v11, %s3128_s17  ;;  %1960 = vrot.lane.b32.xlu0 %v3547_v29, %s3114_s19 }
 0x2c6   : > { %v3553_v33 = vpop.permute.xlu0 %1634  ;;  %v3555_v34 = vpop.permute.xlu1 %1509 }
 0x2c7   : > { %4639 = vst [vmem:[#allocation15_spill] sm:$0xff] %v3553_v33  ;;  %v1427_v33 = vld [vmem:[%s4596_s4 + $0x10] sm:$0xc0] }
 0x2c8   : > { %2011 = vrot.lane.b32.xlu0 %v3559_v35, %s3112_s15  ;;  %1298 = vrot.lane.b32.xlu1 %v1284_v36, %s3116_s27 }
 0x2ca   : > { %v3566_v37 = vpop.permute.xlu0 %1642  ;;  %v3568_v38 = vpop.permute.xlu1 %1550 }
 0x2cb   : > { %4640 = vst [vmem:[#allocation16_spill] sm:$0xff] %v3566_v37 }
 0x2cc   : > { %1342 = vrot.lane.b32.xlu1 %v1331_v17, %s3118_s13 }
 0x2ce   : > { %v3571_v39 = vpop.permute.xlu0 %1756  ;;  %v3573_v40 = vpop.permute.xlu1 %1669 }
 0x2cf   : > { %4641 = vst [vmem:[#allocation17_spill] sm:$0xff] %v3571_v39  ;;  %v4609_v39 = vmov 0  }
 0x2d0   : > { %1390 = vrot.lane.b32.xlu1 %v1384_v20, %s3120_s8  ;;  %3012 = vset.pattern.permute.xlu0 %v4609_v39 }
 0x2d2   : > { %v3578_v42 = vpop.permute.xlu0 %1793  ;;  %v3580_v43 = vpop.permute.xlu1 %1710 }
 0x2d3   : > { %4642 = vst [vmem:[#allocation18_spill] sm:$0xff] %v3578_v42 }
 0x2d4   : > { %1431 = vrot.lane.b32.xlu1 %v1429_v44, %s3115_s20 }
 0x2d6   : > { %v3586_v46 = vpop.permute.xlu0 %1801  ;;  %v3588_v47 = vpop.permute.xlu1 %1966 }
 0x2d7   : > { %4643 = vst [vmem:[#allocation19_spill] sm:$0xff] %v3586_v46  ;;  %4644 = vst [vmem:[#allocation20_spill] sm:$0xff] %v3588_v47 }
 0x2d8   : > { %1439 = vrot.lane.b32.xlu1 %v1430_v48, %s3115_s20 }
 0x2da   : > { %v3593_v51 = vpop.permute.xlu0 %1901  ;;  %v3595_v52 = vpop.permute.xlu1 %2005 }
 0x2db   : > { %4645 = vst [vmem:[#allocation21_spill] sm:$0xff] %v3593_v51  ;;  %4646 = vst [vmem:[#allocation22_spill] sm:$0xff] %v3595_v52 }
 0x2dc   : > { %1480 = vrot.lane.b32.xlu1 %v1284_v36, %s3117_s21 }
 0x2de   : > { %v3601_v57 = vpop.permute.xlu0 %2041  ;;  %v3603_v58 = vpop.permute.xlu1 %1294 }
 0x2df   : > { %4647 = vst [vmem:[#allocation23_spill] sm:$0xff] %v3601_v57 }
 0x2e0   : > { %1591 = vrot.lane.b32.xlu1 %v1429_v44, %s3119_s3 }
 0x2e2   : > { %v3607_v63 = vpop.permute.xlu0 %1348  ;;  %v3609_v0 = vpop.permute.xlu1 %1296 }
 0x2e4   : > { %1599 = vrot.lane.b32.xlu1 %v1430_v48, %s3119_s3 }
 0x2e6   : > { %v3613_v2 = vpop.permute.xlu0 %1433  ;;  %v3615_v3 = vpop.permute.xlu1 %1340 }
 0x2e7   : > { %1236 = vadd.xlane.f32.xlu0 %v1235_v1 }
 0x2e8   : > { %1640 = vrot.lane.b32.xlu1 %v1284_v36, %s3121_s22 }
 0x2ea   : > { %v3618_v4 = vpop.permute.xlu0 %1478  ;;  %v3620_v5 = vpop.permute.xlu1 %1346 }
 0x2ec   : > { %1750 = vrot.lane.b32.xlu1 %v1429_v44, %s3124_s10 }
 0x2ee   : > { %v3623_v7 = vpop.permute.xlu0 %1511  ;;  %v3625_v8 = vpop.permute.xlu1 %1386 }
 0x2f0   : > { %1758 = vrot.lane.b32.xlu1 %v1430_v48, %s3124_s10 }
 0x2f2   : > { %v3628_v13 = vpop.permute.xlu0 %1548  ;;  %v3630_v17 = vpop.permute.xlu1 %1392 }
 0x2f4   : > { %1799 = vrot.lane.b32.xlu1 %v1284_v36, %s3126_s14 }
 0x2f6   : > { %v3633_v20 = vpop.permute.xlu0 %1556  ;;  %v3635_v41 = vpop.permute.xlu1 %1394 }
 0x2f7   : > { %v1400_v23 = vsel %vm1396_vm11, %v3630_v17, %v3635_v41  ;;  %v1426_v41 = vld [vmem:[%s4596_s4 + $0x8] sm:$0xc0] }
 0x2f8   : > { %1903 = vrot.lane.b32.xlu1 %v3639_v45, %s3113_s18 }
 0x2fa   : > { %v3643_v44 = vpop.permute.xlu0 %1593  ;;  %v3645_v48 = vpop.permute.xlu1 %1435 }
 0x2fc   : > { %2039 = vrot.lane.b32.xlu1 %v3649_v49, %s3128_s17 }
 0x2fd   : > { %2045 = vrot.lane.b32.xlu0 %v3375_v30, %s3128_s17 }
 0x2fe   : > { %v3655_v36 = vpop.permute.xlu0 %1638  ;;  %v3657_v50 = vpop.permute.xlu1 %1476 }
 0x2ff   : > { %4649 = vst [vmem:[#allocation25_spill] sm:$0xff] %v3655_v36 }
 0x300   : > { %2080 = vrot.lane.b32.xlu1 %v3486_v10, %s3116_s27 }
 0x301   : > { %2082 = vrot.lane.b32.xlu0 %v3415_v61, %s3116_s27 }
 0x302   : > { %v3663_v53 = vpop.permute.xlu0 %1671  ;;  %v3665_v54 = vpop.permute.xlu1 %1505 }
 0x304   : > { %2084 = vrot.lane.b32.xlu1 %v3639_v45, %s3116_s27 }
 0x305   : > { %2086 = vrot.lane.b32.xlu0 %v3478_v9, %s3116_s27 }
 0x306   : > { %v3671_v55 = vpop.permute.xlu0 %1708  ;;  %v3673_v56 = vpop.permute.xlu1 %1513 }
 0x308   : > { %2088 = vrot.lane.b32.xlu1 %v3381_v31, %s3116_s27 }
 0x309   : > { %2122 = vrot.lane.b32.xlu0 %v3547_v29, %s3118_s13 }
 0x30a   : > { %v1717_v59 = vpop.permute.xlu0 %1716  ;;  %v3679_v60 = vpop.permute.xlu1 %1554 }
 0x30c   : > { %2124 = vrot.lane.b32.xlu1 %v3505_v14, %s3118_s13 }
 0x30d   : > { %2126 = vrot.lane.b32.xlu0 %v3486_v10, %s3118_s13 }
 0x30e   : > { %v3685_v62 = vpop.permute.xlu0 %1752  ;;  %v3687_v26 = vpop.permute.xlu1 %1595 }
 0x30f   : > { %4650 = vst [vmem:[#allocation26_spill] sm:$0xff] %v3685_v62  ;;  %v1304_v62 = vsel %vm1302_vm13, %v3603_v58, %v3609_v0 }
 0x310   : > { %2128 = vrot.lane.b32.xlu1 %v3415_v61, %s3118_s13 }
 0x311   : > { %2130 = vrot.lane.b32.xlu0 %v3385_v32, %s3118_s13 }
 0x312   : > { %v3693_v1 = vpop.permute.xlu0 %1797  ;;  %v3695_v6 = vpop.permute.xlu1 %1636 }
 0x313   : > { %4651 = vst [vmem:[#allocation27_spill] sm:$0xff] %v3693_v1 }
 0x314   : > { %2164 = vrot.lane.b32.xlu1 %v3415_v61, %s3120_s8 }
 0x315   : > { %2166 = vrot.lane.b32.xlu0 %v3494_v11, %s3120_s8 }
 0x316   : > { %v3701_v57 = vpop.permute.xlu0 %1905  ;;  %v3703_v12 = vpop.permute.xlu1 %1665 }
 0x317   : > { %4652 = vst [vmem:[#allocation28_spill] sm:$0xff] %v3701_v57  ;;  %4653 = vst [vmem:[#allocation29_spill] sm:$0xff] %v3703_v12  ;;  %v1397_v12 = vsel %vm1396_vm11, %v3625_v8, %v3543_v27 }
 0x318   : > { %2168 = vrot.lane.b32.xlu1 %v3478_v9, %s3120_s8 }
 0x319   : > { %2170 = vrot.lane.b32.xlu0 %v3559_v35, %s3120_s8 }
 0x31a   : > { %v3709_v52 = vpop.permute.xlu0 %1964  ;;  %v1674_v46 = vpop.permute.xlu1 %1673 }
 0x31b   : > { %4654 = vst [vmem:[#allocation30_spill] sm:$0xff] %v3709_v52  ;;  %v3713_v42 = vsel %vm1675_vm6, %v3663_v53, %v1674_v46 }
 0x31c   : > { %4655 = vst [vmem:[#allocation31_spill] sm:$0xff] %v3713_v42  ;;  %2172 = vrot.lane.b32.xlu1 %v3372_v28, %s3120_s8 }
 0x31d   : > { %2194 = vrot.lane.b32.xlu0 %v3505_v14, %s3115_s20 }
 0x31e   : > { %v3719_v57 = vpop.permute.xlu0 %2007  ;;  %v1715_v15 = vpop.permute.xlu1 %1714 }
 0x31f   : > { %4656 = vst [vmem:[#allocation32_spill] sm:$0xff] %v3719_v57  ;;  %v3722_v47 = vsel %vm984_vm3, %v1715_v15, %v1717_v59 }
 0x320   : > { %4657 = vst [vmem:[#allocation33_spill] sm:$0xff] %v3722_v47  ;;  %2196 = vrot.lane.b32.xlu1 %v3649_v49, %s3115_s20  ;;  %v3130_v47 = vmov 4  }
 0x321   : > { %2198 = vrot.lane.b32.xlu0 %v3415_v61, %s3115_s20  ;;  %3013 = vset.pattern.permute.xlu1 %v3130_v47  ;;  %v1820_v47 = vld [vmem:[%s4596_s4 + $0x60] sm:$0xc] }
 0x322   : > { %v3728_v46 = vpop.permute.xlu0 %2037  ;;  %v3730_v16 = vpop.permute.xlu1 %1754 }
 0x323   : > { %4658 = vst [vmem:[#allocation34_spill] sm:$0xff] %v3728_v46  ;;  %4659 = vst [vmem:[#allocation35_spill] sm:$0xff] %v3730_v16 }
 0x324   : > { %2200 = vrot.lane.b32.xlu1 %v3494_v11, %s3115_s20 }
 0x325   : > { %2202 = vrot.lane.b32.xlu0 %v3375_v30, %s3115_s20 }
 0x326   : > { %v3736_v51 = vpop.permute.xlu0 %1507  ;;  %v3738_v59 = vpop.permute.xlu1 %1795 }
 0x327   : > { %4660 = vst [vmem:[#allocation36_spill] sm:$0xff] %v3738_v59 }
 0x328   : > { %2236 = vrot.lane.b32.xlu1 %v3486_v10, %s3117_s21 }
 0x329   : > { %2238 = vrot.lane.b32.xlu0 %v3415_v61, %s3117_s21 }
 0x32a   : > { %v3744_v37 = vpop.permute.xlu1 %1899  ;;  %v3746_v46 = vpop.permute.xlu0 %1552 }
 0x32b   : > { %4661 = vst [vmem:[#allocation37_spill] sm:$0xff] %v3744_v37 }
 0x32c   : > { %2240 = vrot.lane.b32.xlu1 %v3639_v45, %s3117_s21  ;;  %v1379_v45 = vld [vmem:[%s4596_s4] sm:$0x30] }
 0x32d   : > { %2242 = vrot.lane.b32.xlu0 %v3478_v9, %s3117_s21 }
 0x32e   : > { %v1963_v42 = vpop.permute.xlu1 %1962  ;;  %v3753_v59 = vpop.permute.xlu0 %1667 }
 0x32f   : > { %4662 = vst [vmem:[#allocation38_spill] sm:$0xff] %v3753_v59  ;;  %v3757_v37 = vsel %vm1970_vm7, %v1963_v42, %v3709_v52  ;;  %v1260_v59 = vld [vmem:[%s4596_s4] sm:$0x3] }
 0x330   : > { %4663 = vst [vmem:[#allocation39_spill] sm:$0xff] %v3757_v37  ;;  %2244 = vrot.lane.b32.xlu1 %v3381_v31, %s3117_s21  ;;  %v3782_v31 = vmul.f32 %v3505_v14, %v1820_v47  ;;  %v1503_v47 = vld [vmem:[%s4596_s4 + $0x30] sm:$0xc] }
 0x331   : > { %2278 = vrot.lane.b32.xlu0 %v3547_v29, %s3122_s23  ;;  %v1822_v29 = vld [vmem:[%s4596_s4 + $0x70] sm:$0xc] }
 0x332   : > { %v2010_v39 = vpop.permute.xlu1 %2009  ;;  %v3766_v1 = vpop.permute.xlu0 %1712  ;;  %4667 = vst [vmem:[#allocation43_spill] sm:$0xff] %v3782_v31  ;;  %v1518_v31 = vsel %vm1515_vm9, %v3555_v34, %v3623_v7  ;;  %v3825_v8 = vmul.f32 %v3415_v61, %v1822_v29  ;;  %v1443_v29 = vsel %vm1441_vm14, %v3613_v2, %v3645_v48 }
 0x333   : > { %4664 = vst [vmem:[#allocation40_spill] sm:$0xff] %v3766_v1  ;;  %v3770_v37 = vsel %vm2015_vm10, %v3719_v57, %v2010_v39  ;;  %v3774_v52 = vsel %vm984_vm3, %v3766_v1, %v1715_v15  ;;  %v1322_v15 = vld [vmem:[%s4596_s4 + $0x18] sm:$0xc]  ;;  %v1353_v57 = vsel %vm1350_vm8, %v3536_v24, %v3620_v5  ;;  %v3855_v36 = vmul.f32 %v1518_v31, %v1503_v47 }
 0x334   : > { %4665 = vst [vmem:[#allocation41_spill] sm:$0xff] %v3770_v37  ;;  %4666 = vst [vmem:[#allocation42_spill] sm:$0xff] %v3774_v52  ;;  %2280 = vrot.lane.b32.xlu1 %v3505_v14, %s3122_s23  ;;  %v1321_v37 = vld [vmem:[%s4596_s4 + $0x10] sm:$0xc]  ;;  %v1354_v52 = vsel %vm1350_vm8, %v3620_v5, %v3607_v63  ;;  %v1544_v63 = vld [vmem:[%s4596_s4 + $0x20] sm:$0x30]  ;;  %v1559_v5 = vsel %vm1558_vm12, %v3628_v13, %v3568_v38  ;;  %v1303_v13 = vsel %vm1302_vm13, %v3520_v19, %v3603_v58 }
 0x335   : > { %2282 = vrot.lane.b32.xlu0 %v3486_v10, %s3122_s23  ;;  %v1382_v10 = vld [vmem:[%s4596_s4 + $0x18] sm:$0x30]  ;;  %4669 = vst [vmem:[#allocation45_spill] sm:$0xff] %v3825_v8  ;;  %v1821_v8 = vld [vmem:[%s4596_s4 + $0x68] sm:$0xc]  ;;  %v3851_v58 = vmul.f32 %v1353_v57, %v1321_v37  ;;  %v3853_v16 = vmul.f32 %v1354_v52, %v1322_v15  ;;  %v3873_v31 = vmul.f32 %v1303_v13, %v1260_v59 }
 0x336   : > { %v3822_v30 = vpop.permute.xlu1 %2043  ;;  %v1961_v1 = vpop.permute.xlu0 %1960  ;;  %v1261_v19 = vld [vmem:[%s4596_s4 + $0x8] sm:$0x3]  ;;  %v3869_v37 = vmul.f32 %v1400_v23, %v1382_v10  ;;  %v3875_v52 = vmul.f32 %v1443_v29, %v1426_v41  ;;  %v3880_v15 = vmul.f32 %v3649_v49, %v1821_v8  ;;  %v1470_v10 = vld [vmem:[%s4596_s4 + $0x20] sm:$0x3]  ;;  %v1504_v23 = vld [vmem:[%s4596_s4 + $0x38] sm:$0xc]  ;;  %v1519_v59 = vsel %vm1515_vm9, %v3623_v7, %v3673_v56 }
 0x337   : > { %4668 = vst [vmem:[#allocation44_spill] sm:$0xff] %v3822_v30  ;;  %v3843_v30 = vsel %vm1970_vm7, %v1961_v1, %v1963_v42  ;;  %v1444_v42 = vsel %vm1441_vm14, %v3645_v48, %v3518_v18  ;;  %v3865_v1 = vmul.f32 %v1397_v12, %v1379_v45  ;;  %v3882_v12 = vmul.f32 %v1304_v62, %v1261_v19  ;;  %v1319_v7 = vld [vmem:[%s4596_s4] sm:$0xc]  ;;  %v1704_v29 = vld [vmem:[%s4596_s4 + $0x40] sm:$0x30] }
 0x338   : > { %4670 = vst [vmem:[#allocation46_spill] sm:$0xff] %v3843_v30  ;;  %2284 = vrot.lane.b32.xlu1 %v3415_v61, %s3122_s23  ;;  %v3867_v30 = vmul.f32 %v1559_v5, %v1544_v63  ;;  %v3884_v45 = vmul.f32 %v1444_v42, %v1427_v33  ;;  %v1369_v62 = vrot.slane %v3851_v58, 2  ;;  %v1370_v47 = vrot.slane %v3853_v16, 2 }
 0x339   : > { %2286 = vrot.lane.b32.xlu0 %v3385_v32, %s3122_s23  ;;  %v1471_v32 = vld [vmem:[%s4596_s4 + $0x28] sm:$0x3]  ;;  %v1485_v5 = vsel %vm1484_vm15, %v3527_v21, %v3657_v50  ;;  %v1486_v13 = vsel %vm1484_vm15, %v3657_v50, %v3618_v4  ;;  %v1320_v21 = vld [vmem:[%s4596_s4 + $0x8] sm:$0xc]  ;;  %v1459_v41 = vrot.slane %v3875_v52, 6  ;;  %v1718_v19 = vsel %vm984_vm3, %v3671_v55, %v3580_v43 }
 0x33a   : > { %v3877_v57 = vpop.permute.xlu0 %2011  ;;  %v1299_v48 = vpop.permute.xlu1 %1298  ;;  %v3931_v58 = vmul.f32 %v1519_v59, %v1504_v23  ;;  %v1262_v50 = vld [vmem:[%s4596_s4 + $0x10] sm:$0x3]  ;;  %v3939_v8 = vmul.f32 %v1485_v5, %v1470_v10  ;;  %v3945_v23 = vmul.f32 %v1486_v13, %v1471_v32  ;;  %v1547_v59 = vld [vmem:[%s4596_s4 + $0x38] sm:$0x30]  ;;  %v1588_v32 = vld [vmem:[%s4596_s4 + $0x28] sm:$0xc0] }
 0x33b   : > { %v3900_v33 = vsel %vm2015_vm10, %v2010_v39, %v3877_v57  ;;  %v1305_v42 = vsel %vm1302_vm13, %v3609_v0, %v1299_v48  ;;  %v1562_v0 = vsel %vm1558_vm12, %v3679_v60, %v3633_v20  ;;  %v1603_v20 = vsel %vm1601_vm1, %v3643_v44, %v3687_v26  ;;  %v1380_v5 = vld [vmem:[%s4596_s4 + $0x8] sm:$0x30]  ;;  %v1631_v52 = vld [vmem:[%s4596_s4 + $0x48] sm:$0x3] }
 0x33c   : > { %2320 = vrot.lane.b32.xlu1 %v3415_v61, %s3123_s26  ;;  %v1306_v13 = vsel %vm1302_vm13, %v1299_v48, %v3529_v22  ;;  %v3994_v22 = vmul.f32 %v1603_v20, %v1588_v32  ;;  %v1502_v48 = vld [vmem:[%s4596_s4 + $0x28] sm:$0xc] }
 0x33d   : > { %2322 = vrot.lane.b32.xlu0 %v3494_v11, %s3123_s26 }
 0x33e   : > { %v1343_v63 = vpop.permute.xlu1 %1342 }
 0x33f   : > { %v1351_v39 = vsel %vm1350_vm8, %v3615_v3, %v1343_v63  ;;  %v1352_v55 = vsel %vm1350_vm8, %v1343_v63, %v3536_v24  ;;  %v3958_v24 = vsel %vm1675_vm6, %v3573_v40, %v3663_v53  ;;  %v3960_v3 = vmul.f32 %v1718_v19, %v1704_v29  ;;  %v1381_v53 = vld [vmem:[%s4596_s4 + $0x10] sm:$0x30] }
 0x340   : > { %v1359_v56 = vmul.f32 %v1351_v39, %v1319_v7  ;;  %v1360_v10 = vmul.f32 %v1352_v55, %v1320_v21  ;;  %2324 = vrot.lane.b32.xlu1 %v3478_v9, %s3123_s26  ;;  %v1313_v63 = vmul.f32 %v1305_v42, %v1262_v50  ;;  %v1263_v39 = vld [vmem:[%s4596_s4 + $0x18] sm:$0x3]  ;;  %v3982_v19 = vmul.f32 %v1562_v0, %v1547_v59  ;;  %v1589_v7 = vld [vmem:[%s4596_s4 + $0x30] sm:$0xc0] }
 0x341   : > { %2326 = vrot.lane.b32.xlu0 %v3559_v35, %s3123_s26  ;;  %v1604_v50 = vsel %vm1601_vm1, %v3687_v26, %v3541_v25  ;;  %v1517_v26 = vsel %vm1515_vm9, %v3736_v51, %v3555_v34  ;;  %v1314_v0 = vmul.f32 %v1306_v13, %v1263_v39  ;;  %v1425_v34 = vld [vmem:[%s4596_s4] sm:$0xc0]  ;;  %v1619_v39 = vrot.slane %v3994_v22, 6 }
 0x342   : > { %v1367_v21 = vrot.slane %v1359_v56, 2  ;;  %v1368_v29 = vrot.slane %v1360_v10, 2  ;;  %v1391_v35 = vpop.permute.xlu1 %1390  ;;  %v1377_v10 = vadd.f32 %v1369_v62, %v1313_v63  ;;  %v4024_v63 = vmul.f32 %v1604_v50, %v1589_v7 }
 0x343   : > { %v1398_v42 = vsel %vm1396_vm11, %v3543_v27, %v1391_v35  ;;  %v1399_v55 = vsel %vm1396_vm11, %v1391_v35, %v3630_v17  ;;  %v1516_v27 = vsel %vm1515_vm9, %v3665_v54, %v3736_v51  ;;  %v1560_v17 = vsel %vm1558_vm12, %v3568_v38, %v3746_v46  ;;  %v1545_v51 = vld [vmem:[%s4596_s4 + $0x28] sm:$0x30] }
 0x344   : > { %v1406_v56 = vmul.f32 %v1398_v42, %v1380_v5  ;;  %v1407_v59 = vmul.f32 %v1399_v55, %v1381_v53  ;;  %2328 = vrot.lane.b32.xlu1 %v3372_v28, %s3123_s26  ;;  %v1501_v28 = vld [vmem:[%s4596_s4 + $0x20] sm:$0xc]  ;;  %v1375_v54 = vadd.f32 %v1367_v21, %v3873_v31  ;;  %v1376_v38 = vadd.f32 %v1368_v29, %v3882_v12 }
 0x345   : > { %2350 = vrot.lane.b32.xlu0 %v3505_v14, %s3119_s3  ;;  %v1578_v14 = vrot.slane %v3982_v19, 4  ;;  %v1525_v5 = vmul.f32 %v1517_v26, %v1502_v48  ;;  %v4671_v31 = vld [vmem:[#allocation15_spill] sm:$0xff]  ;;  %v1524_v21 = vmul.f32 %v1516_v27, %v1501_v28  ;;  %v1561_v7 = vsel %vm1558_vm12, %v3746_v46, %v3679_v60  ;;  %v4673_v26 = vld [vmem:[#allocation25_spill] sm:$0xff]  ;;  %v4675_v27 = vld [vmem:[#allocation26_spill] sm:$0xff] }
 0x346   : > { %v1414_v62 = vrot.slane %v1406_v56, 4  ;;  %v1415_v32 = vrot.slane %v1407_v59, 4  ;;  %v1432_v20 = vpop.permute.xlu1 %1431  ;;  %v4034_v12 = vsel %vm1644_vm2, %v4671_v31, %v3695_v6  ;;  %v1568_v29 = vmul.f32 %v1560_v17, %v1545_v51  ;;  %v4674_v59 = vld [vmem:[#allocation35_spill] sm:$0xff] }
 0x347   : > { %v1442_v53 = vsel %vm1441_vm14, %v1432_v20, %v3613_v2  ;;  %v1428_v2 = vld [vmem:[%s4596_s4 + $0x18] sm:$0xc0]  ;;  %v1378_v50 = vadd.f32 %v1370_v47, %v1314_v0  ;;  %v4672_v60 = vrot.slane %v3865_v1, 4  ;;  %v1646_v56 = vsel %vm1644_vm2, %v3695_v6, %v4673_v26  ;;  %v1662_v1 = vld [vmem:[%s4596_s4 + $0x48] sm:$0xc]  ;;  %v4676_v47 = vld [vmem:[#allocation38_spill] sm:$0xff] }
 0x348   : > { %v1422_v13 = vadd.f32 %v1414_v62, %v1376_v38  ;;  %v1423_v35 = vadd.f32 %v1415_v32, %v1377_v10  ;;  %v1450_v42 = vmul.f32 %v1442_v53, %v1425_v34  ;;  %2352 = vrot.lane.b32.xlu1 %v3649_v49, %s3119_s3  ;;  %v1546_v49 = vld [vmem:[%s4596_s4 + $0x30] sm:$0x30]  ;;  %v1762_v17 = vsel %vm1760_vm4, %v4675_v27, %v4674_v59  ;;  %v4678_v62 = vld [vmem:[#allocation8_spill] sm:$0xff]  ;;  %v1747_v32 = vld [vmem:[%s4596_s4 + $0x48] sm:$0xc0] }
 0x349   : > { %2354 = vrot.lane.b32.xlu0 %v3415_v61, %s3119_s3  ;;  %v1421_v46 = vadd.f32 %v4672_v60, %v1375_v54  ;;  %v1533_v10 = vrot.slane %v1525_v5, 2  ;;  %v1677_v6 = vsel %vm1675_vm6, %v4676_v47, %v3573_v40  ;;  %v1569_v28 = vmul.f32 %v1561_v7, %v1546_v49  ;;  %v4677_v54 = vld [vmem:[#allocation40_spill] sm:$0xff]  ;;  %v1472_v40 = vld [vmem:[%s4596_s4 + $0x30] sm:$0x3]  ;;  %v1705_v20 = vld [vmem:[%s4596_s4 + $0x48] sm:$0x30] }
 0x34a   : > { %v1467_v55 = vadd.f32 %v1459_v41, %v1422_v13  ;;  %v1458_v22 = vrot.slane %v1450_v42, 6  ;;  %v1440_v48 = vpop.permute.xlu1 %1439  ;;  %v1576_v51 = vrot.slane %v1568_v29, 4  ;;  %v1719_v38 = vsel %vm984_vm3, %v3580_v43, %v4677_v54  ;;  %v4681_v49 = vld [vmem:[#allocation14_spill] sm:$0xff]  ;;  %v1630_v54 = vld [vmem:[%s4596_s4 + $0x40] sm:$0x3] }
 0x34b   : > { %v1445_v16 = vsel %vm1441_vm14, %v3518_v18, %v1440_v48  ;;  %v1532_v18 = vrot.slane %v1524_v21, 2  ;;  %v4679_v43 = vrot.slane %v3869_v37, 4  ;;  %v1685_v21 = vmul.f32 %v1677_v6, %v1662_v1 }
 0x34c   : > { %v1498_v41 = vadd.f32 %v3945_v23, %v1467_v55  ;;  %v1466_v0 = vadd.f32 %v1458_v22, %v1421_v46  ;;  %v1453_v34 = vmul.f32 %v1445_v16, %v1428_v2  ;;  %2356 = vrot.lane.b32.xlu1 %v3494_v11, %s3119_s3  ;;  %v1473_v23 = vld [vmem:[%s4596_s4 + $0x38] sm:$0x3]  ;;  %v4680_v7 = vrot.slane %v3884_v45, 6  ;;  %v1661_v16 = vld [vmem:[%s4596_s4 + $0x40] sm:$0xc] }
 0x34d   : > { %2358 = vrot.lane.b32.xlu0 %v4678_v62, %s3119_s3  ;;  %v1424_v5 = vadd.f32 %v4679_v43, %v1378_v50  ;;  %v4682_v50 = vld [vmem:[#allocation10_spill] sm:$0xff]  ;;  %v1770_v48 = vmul.f32 %v1762_v17, %v1747_v32  ;;  %v4688_v32 = vld [vmem:[#allocation27_spill] sm:$0xff]  ;;  %vm1909_vm3 = vcmask 1039360  }
 0x34e   : > { %v1541_v53 = vadd.f32 %v1533_v10, %v1498_v41  ;;  %v1497_v13 = vadd.f32 %v3939_v8, %v1466_v0  ;;  %v1461_v42 = vrot.slane %v1453_v34, 6  ;;  %v1481_v31 = vpop.permute.xlu1 %1480  ;;  %v1468_v29 = vadd.f32 %v4680_v7, %v1423_v35  ;;  %v1663_v35 = vld [vmem:[%s4596_s4 + $0x50] sm:$0xc] }
 0x34f   : > { %v1487_v2 = vsel %vm1484_vm15, %v3618_v4, %v1481_v31  ;;  %v1488_v55 = vsel %vm1484_vm15, %v1481_v31, %v4681_v49  ;;  %v1654_v8 = vmul.f32 %v1646_v56, %v1631_v52  ;;  %v1727_v10 = vmul.f32 %v1719_v38, %v1705_v20  ;;  %v1587_v4 = vld [vmem:[%s4596_s4 + $0x20] sm:$0xc0]  ;;  %v4683_v56 = vld [vmem:[#allocation29_spill] sm:$0xff] }
 0x350   : > { %v1584_v60 = vadd.f32 %v1576_v51, %v1541_v53  ;;  %v1469_v46 = vadd.f32 %v1461_v42, %v1424_v5  ;;  %v1495_v22 = vmul.f32 %v1487_v2, %v1472_v40  ;;  %v1496_v37 = vmul.f32 %v1488_v55, %v1473_v23  ;;  %2392 = vrot.lane.b32.xlu1 %v4682_v50, %s3121_s22  ;;  %v4689_v20 = vld [vmem:[#allocation36_spill] sm:$0xff]  ;;  %v4692_v50 = vld [vmem:[#allocation33_spill] sm:$0xff] }
 0x351   : > { %2394 = vrot.lane.b32.xlu0 %v3415_v61, %s3121_s22  ;;  %v1540_v45 = vadd.f32 %v1532_v18, %v1497_v13  ;;  %v1676_v17 = vsel %vm1675_vm6, %v4683_v56, %v4676_v47  ;;  %v1577_v41 = vrot.slane %v1569_v28, 4  ;;  %v1693_v0 = vrot.slane %v1685_v21, 2  ;;  %v4687_v28 = vld [vmem:[#allocation24_spill] sm:$0xff] }
 0x352   : > { %v1627_v52 = vadd.f32 %v1619_v39, %v1584_v60  ;;  %v1499_v1 = vadd.f32 %v1495_v22, %v1468_v29  ;;  %v1500_v61 = vadd.f32 %v1496_v37, %v1469_v46  ;;  %v1592_v6 = vpop.permute.xlu1 %1591  ;;  %v4684_v34 = vrot.slane %v3867_v30, 4  ;;  %v1790_v53 = vld [vmem:[%s4596_s4 + $0x68] sm:$0x3]  ;;  %v1706_v60 = vld [vmem:[%s4596_s4 + $0x50] sm:$0x30]  ;;  %v4691_v37 = vld [vmem:[#allocation31_spill] sm:$0xff] }
 0x353   : > { %v1602_v51 = vsel %vm1601_vm1, %v1592_v6, %v3643_v44  ;;  %v4685_v38 = vrot.slane %v3855_v36, 2  ;;  %v4686_v39 = vrot.slane %v3931_v58, 2  ;;  %v4129_v30 = vmul.f32 %v3958_v24, %v1663_v35  ;;  %v1664_v44 = vld [vmem:[%s4596_s4 + $0x58] sm:$0xc]  ;;  %v1590_v58 = vld [vmem:[%s4596_s4 + $0x38] sm:$0xc0] }
 0x354   : > { %v1583_v18 = vadd.f32 %v4684_v34, %v1540_v45  ;;  %v1610_v40 = vmul.f32 %v1602_v51, %v1587_v4  ;;  %2396 = vrot.lane.b32.xlu1 %v4687_v28, %s3121_s22  ;;  %v1658_v23 = vadd.f32 %v1654_v8, %v1627_v52  ;;  %v1805_v36 = vsel %vm1803_vm5, %v4689_v20, %v4688_v32  ;;  %v1707_v24 = vld [vmem:[%s4596_s4 + $0x58] sm:$0x30]  ;;  %v4693_v8 = vld [vmem:[#allocation17_spill] sm:$0xff]  ;;  %v4174_v45 = vld [vmem:[%s4598_s6 + $0x4] sm:$0x3] }
 0x355   : > { %v1542_v62 = vadd.f32 %v4685_v38, %v1499_v1  ;;  %v1543_v47 = vadd.f32 %v4686_v39, %v1500_v61  ;;  %v1684_v43 = vmul.f32 %v1676_v17, %v1661_v16  ;;  %v1735_v5 = vrot.slane %v1727_v10, 4  ;;  %2398 = vrot.lane.b32.xlu0 %v3478_v9, %s3121_s22  ;;  %v1633_v10 = vld [vmem:[%s4596_s4 + $0x58] sm:$0x3]  ;;  %v1748_v4 = vld [vmem:[%s4596_s4 + $0x50] sm:$0xc0] }
 0x356   : > { %v1618_v13 = vrot.slane %v1610_v40, 6  ;;  %v1600_v31 = vpop.permute.xlu1 %1599  ;;  %v1701_v9 = vadd.f32 %v1693_v0, %v1658_v23  ;;  %v1734_v7 = vrot.slane %v3960_v3, 4  ;;  %v1620_v29 = vrot.slane %v4024_v63, 6  ;;  %v4694_v52 = vld [vmem:[#allocation42_spill] sm:$0xff] }
 0x357   : > { %v1586_v42 = vadd.f32 %v1578_v14, %v1543_v47  ;;  %v1585_v21 = vadd.f32 %v1577_v41, %v1542_v62  ;;  %v1653_v2 = vmul.f32 %v4034_v12, %v1630_v54  ;;  %v1605_v49 = vsel %vm1601_vm1, %v3541_v25, %v1600_v31  ;;  %v4690_v14 = vld [vmem:[#allocation9_spill] sm:$0xff]  ;;  %v4695_v41 = vld [vmem:[#allocation16_spill] sm:$0xff]  ;;  %v1823_v38 = vld [vmem:[%s4596_s4 + $0x78] sm:$0xc] }
 0x358   : > { %v1778_v55 = vrot.slane %v1770_v48, 6  ;;  %v1626_v46 = vadd.f32 %v1618_v13, %v1583_v18  ;;  %v1613_v19 = vmul.f32 %v1605_v49, %v1590_v58  ;;  %2400 = vrot.lane.b32.xlu1 %v4690_v14, %s3121_s22  ;;  %v1743_v22 = vadd.f32 %v1735_v5, %v1701_v9  ;;  %v1632_v48 = vld [vmem:[%s4596_s4 + $0x50] sm:$0x3]  ;;  %v1866_v5 = vld [vmem:[%s4596_s4 + $0x60] sm:$0x30] }
 0x359   : > { %v1687_v3 = vmul.f32 %v4691_v37, %v1664_v44  ;;  %v1729_v63 = vmul.f32 %v4692_v50, %v1707_v24  ;;  %v1763_v12 = vsel %vm1760_vm4, %v4674_v59, %v4693_v8  ;;  %v1813_v25 = vmul.f32 %v1805_v36, %v1790_v53  ;;  %v4696_v58 = vld [vmem:[#allocation21_spill] sm:$0xff]  ;;  %v1941_v37 = vld [vmem:[%s4596_s4 + $0x78] sm:$0xc0] }
 0x35a   : > { %v1692_v35 = vrot.slane %v1684_v43, 2  ;;  %v1657_v59 = vadd.f32 %v1653_v2, %v1626_v46  ;;  %v1621_v16 = vrot.slane %v1613_v19, 6  ;;  %v1641_v56 = vpop.permute.xlu1 %1640  ;;  %v1786_v17 = vadd.f32 %v1778_v55, %v1743_v22  ;;  %v4697_v24 = vld [vmem:[#allocation37_spill] sm:$0xff]  ;;  %v4699_v2 = vld [vmem:[#allocation20_spill] sm:$0xff]  ;;  %v1749_v22 = vld [vmem:[%s4596_s4 + $0x58] sm:$0xc0] }
 0x35b   : > { %v1728_v1 = vmul.f32 %v4694_v52, %v1706_v60  ;;  %v1628_v61 = vadd.f32 %v1620_v29, %v1585_v21  ;;  %v1647_v6 = vsel %vm1644_vm2, %v4673_v26, %v1641_v56  ;;  %v1648_v0 = vsel %vm1644_vm2, %v1641_v56, %v4695_v41  ;;  %v1746_v26 = vld [vmem:[%s4596_s4 + $0x40] sm:$0xc0]  ;;  %v4698_v29 = vld [vmem:[#allocation13_spill] sm:$0xff] }
 0x35c   : > { %v1629_v34 = vadd.f32 %v1621_v16, %v1586_v42  ;;  %v1655_v18 = vmul.f32 %v1647_v6, %v1632_v48  ;;  %v1656_v51 = vmul.f32 %v1648_v0, %v1633_v10  ;;  %v1700_v54 = vadd.f32 %v1692_v35, %v1657_v59  ;;  %2450 = vperm.xlu1 %3013, %v4174_v45   ;;  %v4700_v55 = vld [vmem:[#allocation12_spill] sm:$0xff]  ;;  %v4704_v35 = vld [vmem:[#allocation45_spill] sm:$0xff]  ;;  %v1792_v0 = vld [vmem:[%s4596_s4 + $0x78] sm:$0x3] }
 0x35d   : > { %v1694_v62 = vrot.slane %v4129_v30, 2  ;;  %v1771_v39 = vmul.f32 %v1763_v12, %v1748_v4  ;;  %v4192_v47 = vadd.f32 %v1813_v25, %v1786_v17  ;;  %v1695_v40 = vrot.slane %v1687_v3, 2  ;;  %v4701_v60 = vld [vmem:[#allocation28_spill] sm:$0xff]  ;;  %v1869_v3 = vld [vmem:[%s4596_s4 + $0x78] sm:$0x30] }
 0x35e   : > { %v1659_v28 = vadd.f32 %v1655_v18, %v1628_v61  ;;  %v1660_v23 = vadd.f32 %v1656_v51, %v1629_v34  ;;  %v1742_v44 = vadd.f32 %v1734_v7, %v1700_v54  ;;  %v1751_v36 = vpop.permute.xlu1 %1750  ;;  %v1737_v43 = vrot.slane %v1729_v63, 4  ;;  %v4234_v16 = vld [vmem:[%s4598_s6 + $0x6] sm:$0x1]  ;;  %v1940_v54 = vld [vmem:[%s4596_s4 + $0x70] sm:$0xc0] }
 0x35f   : > { %v1910_v30 = vsel %vm1909_vm3, %v4697_v24, %v4696_v58  ;;  %v1761_v53 = vsel %vm1760_vm4, %v1751_v36, %v4675_v27  ;;  %v4203_v13 = vmul.f32 %v3494_v11, %v1823_v38  ;;  %v1736_v42 = vrot.slane %v1728_v1, 4  ;;  %v1789_v11 = vld [vmem:[%s4596_s4 + $0x60] sm:$0x3]  ;;  %v4702_v27 = vld [vmem:[#allocation18_spill] sm:$0xff]  ;;  %v1938_v17 = vld [vmem:[%s4596_s4 + $0x60] sm:$0xc0] }
 0x360   : > { %v1702_v31 = vadd.f32 %v1694_v62, %v1659_v28  ;;  %v1703_v21 = vadd.f32 %v1695_v40, %v1660_v23  ;;  %v1769_v9 = vmul.f32 %v1761_v53, %v1746_v26  ;;  %v3131_v7 = vmov 5   ;;  %v4706_v38 = vld [vmem:[#allocation30_spill] sm:$0xff]  ;;  %v4708_v36 = vld [vmem:[#allocation19_spill] sm:$0xff] }
 0x361   : > { %3014 = vset.pattern.permute.xlu1 %v3131_v7  ;;  %v1974_v49 = vsel %vm1970_vm7, %v4699_v2, %v4698_v29  ;;  %v1913_v46 = vsel %vm1909_vm3, %v4701_v60, %v4700_v55  ;;  %v1779_v19 = vrot.slane %v1771_v39, 6  ;;  %v1804_v14 = vsel %vm1803_vm5, %v4702_v27, %v4689_v20  ;;  %v4703_v20 = vld [vmem:[#allocation43_spill] sm:$0xff]  ;;  %v4707_v23 = vld [vmem:[#allocation46_spill] sm:$0xff]  ;;  %v4709_v29 = vld [vmem:[#allocation32_spill] sm:$0xff] }
 0x362   : > { %2474 = vperm.xlu1 %3014, %v4174_v45   ;;  %v1918_v50 = vmul.f32 %v1910_v30, %v1866_v5  ;;  %v1777_v63 = vrot.slane %v1769_v9, 6  ;;  %v1745_v12 = vadd.f32 %v1737_v43, %v1703_v21  ;;  %v1759_v25 = vpop.permute.xlu1 %1758  ;;  %v1744_v48 = vadd.f32 %v1736_v42, %v1702_v31  ;;  %v1939_v5 = vld [vmem:[%s4596_s4 + $0x68] sm:$0xc0]  ;;  %v1867_v9 = vld [vmem:[%s4596_s4 + $0x68] sm:$0x30] }
 0x363   : > { %v1854_v10 = vrot.slane %v4703_v20, 2  ;;  %v1764_v4 = vsel %vm1760_vm4, %v4693_v8, %v1759_v25  ;;  %v1856_v59 = vrot.slane %v4704_v35, 2  ;;  %v1812_v56 = vmul.f32 %v1804_v14, %v1789_v11  ;;  %v1791_v8 = vld [vmem:[%s4596_s4 + $0x70] sm:$0x3]  ;;  %v1999_v7 = vld [vmem:[%s4596_s4 + $0x80] sm:$0x3] }
 0x364   : > { %v1785_v52 = vadd.f32 %v1777_v63, %v1742_v44  ;;  %v1772_v1 = vmul.f32 %v1764_v4, %v1749_v22  ;;  %v1787_v61 = vadd.f32 %v1779_v19, %v1744_v48  ;;  %v4239_v6 = vmul.f32 %v1974_v49, %v1941_v37  ;;  %v4711_v14 = vld [vmem:[#allocation39_spill] sm:$0xff] }
 0x365   : > { %v1921_v41 = vmul.f32 %v1913_v46, %v1869_v3  ;;  %v1857_v34 = vrot.slane %v4203_v13, 2  ;;  %v1855_v18 = vrot.slane %v3880_v15, 2  ;;  %v4705_v51 = vmov 0   ;;  %v4712_v4 = vld [vmem:[#allocation11_spill] sm:$0xff] }
 0x366   : > { %3016 = vset.pattern.permute.xlu1 %v4705_v51  ;;  %v1973_v62 = vsel %vm1970_vm7, %v4706_v38, %v4699_v2  ;;  %v1926_v39 = vrot.slane %v1918_v50, 4  ;;  %vm2047_vm6 = vcmask 973824   ;;  %v1816_v26 = vadd.f32 %v1812_v56, %v1785_v52  ;;  %v1800_v28 = vpop.permute.xlu1 %1799  ;;  %v4710_v2 = vld [vmem:[#allocation22_spill] sm:$0xff]  ;;  %v2032_v56 = vld [vmem:[%s4596_s4 + $0x80] sm:$0xc] }
 0x367   : > { %v1780_v40 = vrot.slane %v1772_v1, 6  ;;  %2520 = vperm.xlu1 %3016, %v4234_v16   ;;  %v1979_v44 = vmul.f32 %v4707_v23, %v1938_v17  ;;  %v1806_v15 = vsel %vm1803_vm5, %v4688_v32, %v1800_v28  ;;  %v1807_v43 = vsel %vm1803_vm5, %v1800_v28, %v4708_v36  ;;  %v1868_v32 = vld [vmem:[%s4596_s4 + $0x70] sm:$0x30]  ;;  %v2002_v17 = vld [vmem:[%s4596_s4 + $0x98] sm:$0x3] }
 0x368   : > { %v1862_v24 = vadd.f32 %v1854_v10, %v1816_v26  ;;  %v1814_v53 = vmul.f32 %v1806_v15, %v1791_v8  ;;  %v1815_v13 = vmul.f32 %v1807_v43, %v1792_v0  ;;  %v1990_v42 = vrot.slane %v4239_v6, 6  ;;  %v2001_v8 = vld [vmem:[%s4596_s4 + $0x90] sm:$0x3] }
 0x369   : > { %v1788_v30 = vadd.f32 %v1780_v40, %v1745_v12  ;;  %v1929_v31 = vrot.slane %v1921_v41, 4  ;;  %v1981_v21 = vmul.f32 %v1973_v62, %v1940_v54  ;;  %v2016_v49 = vsel %vm2015_vm10, %v4710_v2, %v4709_v29  ;;  %v4714_v54 = vld [vmem:[#allocation23_spill] sm:$0xff] }
 0x36a   : > { %v1818_v55 = vadd.f32 %v1814_v53, %v1787_v61  ;;  %v1904_v19 = vpop.permute.xlu1 %1903  ;;  %v1934_v11 = vadd.f32 %v1926_v39, %v1862_v24  ;;  %v3132_v27 = vmov 1   ;;  %v1980_v22 = vmul.f32 %v4711_v14, %v1939_v5 }
 0x36b   : > { %v1819_v46 = vadd.f32 %v1815_v13, %v1788_v30  ;;  %3017 = vset.pattern.permute.xlu1 %v3132_v27  ;;  %v1987_v37 = vrot.slane %v1979_v44, 6  ;;  %v1911_v3 = vsel %vm1909_vm3, %v4696_v58, %v1904_v19  ;;  %v1912_v50 = vsel %vm1909_vm3, %v1904_v19, %v4701_v60  ;;  %v2033_v58 = vld [vmem:[%s4596_s4 + $0x88] sm:$0xc]  ;;  %v2076_v19 = vld [vmem:[%s4596_s4 + $0x80] sm:$0x30] }
 0x36c   : > { %2528 = vperm.xlu1 %3017, %v4234_v16   ;;  %v1864_v63 = vadd.f32 %v1856_v59, %v1818_v55  ;;  %v1919_v25 = vmul.f32 %v1911_v3, %v1867_v9  ;;  %v1920_v48 = vmul.f32 %v1912_v50, %v1868_v32  ;;  %v1989_v20 = vrot.slane %v1981_v21, 6  ;;  %v2000_v59 = vld [vmem:[%s4596_s4 + $0x88] sm:$0x3]  ;;  %v2035_v32 = vld [vmem:[%s4596_s4 + $0x98] sm:$0xc] }
 0x36d   : > { %v1865_v12 = vadd.f32 %v1857_v34, %v1819_v46  ;;  %v2024_v10 = vmul.f32 %v2016_v49, %v1999_v7  ;;  %v2019_v35 = vsel %vm2015_vm10, %v3877_v57, %v4712_v4  ;;  %v1995_v60 = vadd.f32 %v1987_v37, %v1934_v11  ;;  %v4713_v34 = vld [vmem:[#allocation34_spill] sm:$0xff]  ;;  %v2077_v11 = vld [vmem:[%s4596_s4 + $0x88] sm:$0x30] }
 0x36e   : > { %v1863_v57 = vadd.f32 %v1855_v18, %v4192_v47  ;;  %v1927_v1 = vrot.slane %v1919_v25, 4  ;;  %v1928_v61 = vrot.slane %v1920_v48, 4  ;;  %v2040_v6 = vpop.permute.xlu1 %2039  ;;  %v1988_v41 = vrot.slane %v1980_v22, 6  ;;  %v4715_v47 = vld [vmem:[#allocation41_spill] sm:$0xff]  ;;  %v2078_v48 = vld [vmem:[%s4596_s4 + $0x90] sm:$0x30] }
 0x36f   : > { %v1937_v52 = vadd.f32 %v1929_v31, %v1865_v12  ;;  %v2028_v0 = vadd.f32 %v2024_v10, %v1995_v60  ;;  %v2048_v51 = vsel %vm2047_vm6, %v4713_v34, %v2040_v6  ;;  %v2049_v38 = vsel %vm2047_vm6, %v2040_v6, %v4714_v54 }
 0x370   : > { %v1935_v62 = vadd.f32 %v1927_v1, %v1863_v57  ;;  %v1936_v39 = vadd.f32 %v1928_v61, %v1864_v63  ;;  %v2056_v26 = vmul.f32 %v2048_v51, %v2032_v56  ;;  %v2057_v40 = vmul.f32 %v2049_v38, %v2033_v58  ;;  %v2079_v56 = vld [vmem:[%s4596_s4 + $0x98] sm:$0x30] }
 0x371   : > { %v2025_v18 = vmul.f32 %v4715_v47, %v2000_v59  ;;  %v2027_v28 = vmul.f32 %v2019_v35, %v2002_v17  ;;  %v1998_v23 = vadd.f32 %v1990_v42, %v1937_v52  ;;  %v2026_v44 = vmul.f32 %v3900_v33, %v2001_v8  ;;  %v2034_v33 = vld [vmem:[%s4596_s4 + $0x90] sm:$0xc]  ;;  %v4716_v42 = vld [vmem:[#allocation44_spill] sm:$0xff] }
 0x372   : > { %v1996_v15 = vadd.f32 %v1988_v41, %v1935_v62  ;;  %v1997_v36 = vadd.f32 %v1989_v20, %v1936_v39  ;;  %v2064_v43 = vrot.slane %v2056_v26, 2  ;;  %v2065_v30 = vrot.slane %v2057_v40, 2  ;;  %v2081_v13 = vpop.permute.xlu1 %2080 }
 0x373   : > { %v2031_v5 = vadd.f32 %v2027_v28, %v1998_v23  ;;  %v2050_v7 = vsel %vm2047_vm6, %v4714_v54, %v4716_v42 }
 0x374   : > { %v2029_v24 = vadd.f32 %v2025_v18, %v1996_v15  ;;  %v2072_v53 = vadd.f32 %v2064_v43, %v2028_v0  ;;  %v1237_v31 = vpop.xlane.xlu0 %1236  ;;  %v2030_v21 = vadd.f32 %v2026_v44, %v1997_v36  ;;  %v2058_v46 = vmul.f32 %v2050_v7, %v2034_v33  ;;  %v1255_v15 = vld [vmem:[%s4598_s6 + $0x4] sm:$0x3] }
 0x375   : > { %3031 = vrsqrt.f32 %v1237_v31  ;;  %vm1240_vm7 = vcmp.eq.f32.partialorder %v1237_v31, inf  ;;  %vm1242_vm10 = vcmp.eq.f32.partialorder %v1237_v31, 0.0  ;;  %v1243_v60 = vand.u32 2147483648, %v1237_v31 }
 0x376   : > { %v2073_v9 = vadd.f32 %v2065_v30, %v2029_v24  ;;  %v2085_v49 = vpop.permute.xlu1 %2084  ;;  %v2066_v25 = vrot.slane %v2058_v46, 2 }
 0x378   : > { %v2046_v29 = vpop.permute.xlu0 %2045  ;;  %v2074_v8 = vadd.f32 %v2066_v25, %v2030_v21  ;;  %v3134_v21 = vmov 2  }
 0x379   : > { %v2051_v2 = vsel %vm2047_vm6, %v4716_v42, %v2046_v29 }
 0x37a   : > { %v2059_v55 = vmul.f32 %v2051_v2, %v2035_v32  ;;  %v2089_v10 = vpop.permute.xlu1 %2088 }
 0x37c   : > { %v2067_v27 = vrot.slane %v2059_v55, 2  ;;  %v2083_v14 = vpop.permute.xlu0 %2082 }
 0x37d   : > { %v2090_v22 = vsel %vm1302_vm13, %v2081_v13, %v2083_v14  ;;  %v2091_v37 = vsel %vm1302_vm13, %v2083_v14, %v2085_v49  ;;  %v3133_v13 = vmov 3  }
 0x37e   : > { %v2075_v3 = vadd.f32 %v2067_v27, %v2031_v5  ;;  %v2098_v50 = vmul.f32 %v2090_v22, %v2076_v19  ;;  %v2099_v63 = vmul.f32 %v2091_v37, %v2077_v11  ;;  %v2125_v30 = vpop.permute.xlu1 %2124 }
 0x37f   : > { %v3032_v12 = vpop.eup %3031 }
 0x380   : > { %v1239_v20 = vmul.f32 %v3032_v12, %v1237_v31  ;;  %v2106_v4 = vrot.slane %v2098_v50, 4  ;;  %v2107_v35 = vrot.slane %v2099_v63, 4  ;;  %v2087_v58 = vpop.permute.xlu0 %2086 }
 0x381   : > { %v2092_v59 = vsel %vm1302_vm13, %v2085_v49, %v2087_v58  ;;  %v2093_v17 = vsel %vm1302_vm13, %v2087_v58, %v2089_v10  ;;  %v2119_v58 = vld [vmem:[%s4596_s4 + $0x88] sm:$0xc0] }
 0x382   : > { %v1241_v52 = vsel %vm1240_vm7, %v1237_v31, %v1239_v20  ;;  %v4336_v57 = vadd.f32 %v2106_v4, %v2072_v53  ;;  %v4338_v1 = vadd.f32 %v2107_v35, %v2073_v9  ;;  %v2100_v61 = vmul.f32 %v2092_v59, %v2078_v48  ;;  %v2129_v31 = vpop.permute.xlu1 %2128  ;;  %v2118_v35 = vld [vmem:[%s4596_s4 + $0x80] sm:$0xc0] }
 0x383   : > { %v2101_v6 = vmul.f32 %v2093_v17, %v2079_v56  ;;  %v1244_v41 = vsel %vm1242_vm10, %v1243_v60, %v1241_v52  ;;  %v2120_v60 = vld [vmem:[%s4596_s4 + $0x90] sm:$0xc0]  ;;  %v2121_v52 = vld [vmem:[%s4596_s4 + $0x98] sm:$0xc0] }
 0x384   : > { %v2108_v0 = vrot.slane %v2100_v61, 4  ;;  %v1245_v34 = vsel %vm922_vm0, %v1244_v41, 0.0  ;;  %v2123_v5 = vpop.permute.xlu0 %2122 }
 0x385   : > { %v2109_v51 = vrot.slane %v2101_v6, 4  ;;  %v1246_v54 = vrot.slane %v1245_v34, 4  ;;  %v2132_v56 = vsel %vm1350_vm8, %v2123_v5, %v2125_v30 }
 0x386   : > { %v4341_v38 = vadd.f32 %v2108_v0, %v2074_v8  ;;  %v2165_v32 = vpop.permute.xlu1 %2164 }
 0x387   : > { %v4343_v62 = vadd.f32 %v2109_v51, %v2075_v3  ;;  %v1247_v39 = vadd.f32 %v1246_v54, %v1245_v34  ;;  %v2190_v54 = vld [vmem:[%s4596_s4 + $0xa0] sm:$0xc] }
 0x388   : > { %v2127_v53 = vpop.permute.xlu0 %2126 }
 0x389   : > { %v1248_v26 = vrot.slane %v1247_v39, 2  ;;  %v2133_v59 = vsel %vm1350_vm8, %v2125_v30, %v2127_v53  ;;  %v2134_v17 = vsel %vm1350_vm8, %v2127_v53, %v2129_v31  ;;  %v2161_v30 = vld [vmem:[%s4596_s4 + $0xa8] sm:$0x3] }
 0x38a   : > { %v2169_v42 = vpop.permute.xlu1 %2168  ;;  %v2141_v8 = vmul.f32 %v2133_v59, %v2119_v58  ;;  %v2142_v0 = vmul.f32 %v2134_v17, %v2120_v60 }
 0x38b   : > { %v1249_v40 = vadd.f32 %v1248_v26, %v1247_v39  ;;  %v2191_v26 = vld [vmem:[%s4596_s4 + $0xa8] sm:$0xc] }
 0x38c   : > { %v2131_v9 = vpop.permute.xlu0 %2130 }
 0x38d   : > { %v1250_v47 = vrot.slane %v1249_v40, 1  ;;  %v2135_v61 = vsel %vm1350_vm8, %v2129_v31, %v2131_v9  ;;  %v2162_v9 = vld [vmem:[%s4596_s4 + $0xb0] sm:$0x3] }
 0x38e   : > { %v2173_v29 = vpop.permute.xlu1 %2172  ;;  %v2143_v34 = vmul.f32 %v2135_v61, %v2121_v52 }
 0x38f   : > { %v1251_v18 = vadd.f32 %v1250_v47, %v1249_v40  ;;  %v2192_v40 = vld [vmem:[%s4596_s4 + $0xb0] sm:$0xc] }
 0x390   : > { %v2167_v33 = vpop.permute.xlu0 %2166  ;;  %v2151_v5 = vrot.slane %v2143_v34, 6 }
 0x391   : > { %v1253_v28 = vmul.f32 0.5, %v1251_v18  ;;  %v2174_v53 = vsel %vm1396_vm11, %v2165_v32, %v2167_v33  ;;  %v2232_v32 = vld [vmem:[%s4596_s4 + $0xa0] sm:$0x30] }
 0x392   : > { %v2197_v49 = vpop.permute.xlu1 %2196  ;;  %v2159_v17 = vadd.f32 %v2151_v5, %v4343_v62  ;;  %v2275_v62 = vld [vmem:[%s4596_s4 + $0xa8] sm:$0xc0] }
 0x393   : > { %v1254_v23 = vadd.f32 1e-06, %v1253_v28  ;;  %v2193_v28 = vld [vmem:[%s4596_s4 + $0xb8] sm:$0xc] }
 0x394   : > { %v2171_v7 = vpop.permute.xlu0 %2170 }
 0x395   : > { %3033 = vrcp.f32 %v1254_v23  ;;  %v2176_v31 = vsel %vm1396_vm11, %v2169_v42, %v2171_v7 }
 0x396   : > { %v2201_v46 = vpop.permute.xlu1 %2200 }
 0x398   : > { %v2195_v2 = vpop.permute.xlu0 %2194 }
 0x399   : > { %v2204_v39 = vsel %vm1441_vm14, %v2195_v2, %v2197_v49  ;;  %v2163_v2 = vld [vmem:[%s4596_s4 + $0xb8] sm:$0x3] }
 0x39a   : > { %v2237_v11 = vpop.permute.xlu1 %2236 }
 0x39c   : > { %v2199_v55 = vpop.permute.xlu0 %2198 }
 0x39d   : > { %v2205_v47 = vsel %vm1441_vm14, %v2197_v49, %v2199_v55  ;;  %v2206_v18 = vsel %vm1441_vm14, %v2199_v55, %v2201_v46  ;;  %v2212_v49 = vmul.f32 %v2204_v39, %v2190_v54 }
 0x39e   : > { %v2241_v14 = vpop.permute.xlu1 %2240  ;;  %v2213_v55 = vmul.f32 %v2205_v47, %v2191_v26 }
 0x39f   : > { %v3034_v44 = vpop.eup %3033 }
 0x3a0   : > { %v1257_v36 = vmul.f32 %v3034_v44, %v1244_v41  ;;  %v2203_v19 = vpop.permute.xlu0 %2202  ;;  %v2140_v41 = vmul.f32 %v2132_v56, %v2118_v35  ;;  %v2235_v35 = vld [vmem:[%s4596_s4 + $0xb8] sm:$0x30]  ;;  %v2221_v39 = vrot.slane %v2213_v55, 2 }
 0x3a1   : > { %v2207_v23 = vsel %vm1441_vm14, %v2201_v46, %v2203_v19  ;;  %v2214_v46 = vmul.f32 %v2206_v18, %v2192_v40  ;;  %v2276_v40 = vld [vmem:[%s4596_s4 + $0xb0] sm:$0xc0] }
 0x3a2   : > { %v1258_v43 = vmul.f32 %v1257_v36, %v1255_v15  ;;  %v2245_v22 = vpop.permute.xlu1 %2244  ;;  %v2148_v15 = vrot.slane %v2140_v41, 6  ;;  %v2149_v36 = vrot.slane %v2141_v8, 6  ;;  %v2215_v19 = vmul.f32 %v2207_v23, %v2193_v28 }
 0x3a3   : > { %v2184_v41 = vmul.f32 %v2176_v31, %v2162_v9  ;;  %v2222_v26 = vrot.slane %v2214_v46, 2 }
 0x3a4   : > { %v1259_v24 = vadd.f32 1.0, %v1258_v43  ;;  %v2239_v27 = vpop.permute.xlu0 %2238  ;;  %v2150_v43 = vrot.slane %v2142_v0, 6  ;;  %v2156_v59 = vadd.f32 %v2148_v15, %v4336_v57  ;;  %v2223_v57 = vrot.slane %v2215_v19, 2 }
 0x3a6   : > { %2432 = vperm.xlu0 %3012, %v1259_v24   ;;  %v4352_v3 = vpop.permute.xlu1 %2280  ;;  %v2160_v24 = vld [vmem:[%s4596_s4 + $0xa0] sm:$0x3] }
 0x3a7   : > { %v2182_v52 = vmul.f32 %v2174_v53, %v2160_v24 }
 0x3a9   : > { %v2186_v23 = vadd.f32 %v2182_v52, %v2156_v59  ;;  %v2348_v52 = vld [vmem:[%s4596_s4 + $0xd0] sm:$0xc] }
 0x3aa   : > { %3015 = vset.pattern.permute.xlu0 %v3133_v13  ;;  %v4356_v50 = vpop.permute.xlu1 %2284  ;;  %v2175_v13 = vsel %vm1396_vm11, %v2167_v33, %v2169_v42  ;;  %v2233_v33 = vld [vmem:[%s4596_s4 + $0xa8] sm:$0x30]  ;;  %v2246_v42 = vsel %vm1484_vm15, %v2237_v11, %v2239_v27  ;;  %v2157_v11 = vadd.f32 %v2149_v36, %v4338_v1  ;;  %v2274_v1 = vld [vmem:[%s4596_s4 + $0xa0] sm:$0xc0] }
 0x3ab   : > { %2502 = vperm.xlu0 %3015, %v4174_v45   ;;  %v2243_v45 = vpop.permute.xlu0 %2242  ;;  %v2183_v61 = vmul.f32 %v2175_v13, %v2161_v30  ;;  %v2254_v34 = vmul.f32 %v2246_v42, %v2232_v32 }
 0x3ac   : > { %v2248_v56 = vsel %vm1484_vm15, %v2241_v14, %v2243_v45  ;;  %v2249_v58 = vsel %vm1484_vm15, %v2243_v45, %v2245_v22  ;;  %v2220_v22 = vrot.slane %v2212_v49, 2 }
 0x3ad   : > { %v2257_v45 = vmul.f32 %v2249_v58, %v2235_v35  ;;  %v2187_v15 = vadd.f32 %v2183_v61, %v2157_v11  ;;  %v2262_v24 = vrot.slane %v2254_v34, 4  ;;  %v2316_v35 = vld [vmem:[%s4596_s4 + $0xc0] sm:$0x3]  ;;  %v2346_v58 = vld [vmem:[%s4596_s4 + $0xc0] sm:$0xc] }
 0x3ae   : > { %v4360_v12 = vpop.permute.xlu1 %2320 }
 0x3af   : > { %3018 = vset.pattern.permute.xlu0 %v3134_v21  ;;  %v4350_v37 = vpop.permute.xlu0 %2278  ;;  %v2177_v21 = vsel %vm1396_vm11, %v2171_v7, %v2173_v29  ;;  %v2247_v7 = vsel %vm1484_vm15, %v2239_v27, %v2241_v14  ;;  %v2234_v29 = vld [vmem:[%s4596_s4 + $0xb0] sm:$0x30]  ;;  %v2158_v27 = vadd.f32 %v2150_v43, %v4341_v38  ;;  %v2265_v53 = vrot.slane %v2257_v45, 4 }
 0x3b0   : > { %2552 = vperm.xlu0 %3018, %v4234_v16   ;;  %v2185_v8 = vmul.f32 %v2177_v21, %v2163_v2  ;;  %v2255_v14 = vmul.f32 %v2247_v7, %v2233_v33  ;;  %v2256_v54 = vmul.f32 %v2248_v56, %v2234_v29  ;;  %v2288_v38 = vsel %vm1515_vm9, %v4350_v37, %v4352_v3  ;;  %v2277_v37 = vld [vmem:[%s4596_s4 + $0xb8] sm:$0xc0]  ;;  %v2317_v56 = vld [vmem:[%s4596_s4 + $0xc8] sm:$0x3] }
 0x3b1   : > { %v2188_v36 = vadd.f32 %v2184_v41, %v2158_v27  ;;  %v2296_v13 = vmul.f32 %v2288_v38, %v2274_v1  ;;  %v2228_v2 = vadd.f32 %v2220_v22, %v2186_v23  ;;  %v2229_v49 = vadd.f32 %v2221_v39, %v2187_v15 }
 0x3b2   : > { %v4364_v48 = vpop.permute.xlu1 %2324  ;;  %v2189_v43 = vadd.f32 %v2185_v8, %v2159_v17  ;;  %v2263_v30 = vrot.slane %v2255_v14, 4  ;;  %v2347_v17 = vld [vmem:[%s4596_s4 + $0xc8] sm:$0xc]  ;;  %v2319_v14 = vld [vmem:[%s4596_s4 + $0xd8] sm:$0x3] }
 0x3b3   : > { %v4354_v16 = vpop.permute.xlu0 %2282  ;;  %v2230_v55 = vadd.f32 %v2222_v26, %v2188_v36  ;;  %v2270_v19 = vadd.f32 %v2262_v24, %v2228_v2  ;;  %v2304_v33 = vrot.slane %v2296_v13, 6 }
 0x3b4   : > { %v2289_v47 = vsel %vm1515_vm9, %v4352_v3, %v4354_v16  ;;  %v2290_v18 = vsel %vm1515_vm9, %v4354_v16, %v4356_v50  ;;  %v2264_v3 = vrot.slane %v2256_v54, 4  ;;  %v2231_v46 = vadd.f32 %v2223_v57, %v2189_v43 }
 0x3b5   : > { %v2297_v31 = vmul.f32 %v2289_v47, %v2275_v62  ;;  %v2298_v16 = vmul.f32 %v2290_v18, %v2276_v40  ;;  %v2312_v23 = vadd.f32 %v2304_v33, %v2270_v19  ;;  %v4717_v19 = vld [vmem:[#allocation7_spill] sm:$0xff] }
 0x3b6   : > { %v4368_v10 = vpop.permute.xlu1 %2328  ;;  %v2273_v32 = vadd.f32 %v2265_v53, %v2231_v46 }
 0x3b7   : > { %v4358_v63 = vpop.permute.xlu0 %2286  ;;  %v2305_v42 = vrot.slane %v2297_v31, 6  ;;  %v2306_v7 = vrot.slane %v2298_v16, 6 }
 0x3b8   : > { %v2291_v28 = vsel %vm1515_vm9, %v4356_v50, %v4358_v63  ;;  %v2271_v50 = vadd.f32 %v2263_v30, %v2229_v49  ;;  %v2272_v63 = vadd.f32 %v2264_v3, %v2230_v55 }
 0x3b9   : > { %v2299_v21 = vmul.f32 %v2291_v28, %v2277_v37 }
 0x3ba   : > { %v4388_v6 = vpop.permute.xlu1 %2352  ;;  %v2313_v15 = vadd.f32 %v2305_v42, %v2271_v50  ;;  %v2314_v36 = vadd.f32 %v2306_v7, %v2272_v63  ;;  %v4540_v50 = vsub.s32 0, %v4717_v19  ;;  %v2439_v7 = vld [vmem:[%s4597_s5] sm:$0x3] }
 0x3bb   : > { %v4362_v25 = vpop.permute.xlu0 %2322  ;;  %v2307_v29 = vrot.slane %v2299_v21, 6 }
 0x3bc   : > { %v2330_v34 = vsel %vm1558_vm12, %v4360_v12, %v4362_v25 }
 0x3bd   : > { %v2338_v38 = vmul.f32 %v2330_v34, %v2316_v35  ;;  %v2315_v43 = vadd.f32 %v2307_v29, %v2273_v32 }
 0x3be   : > { %v4408_v44 = vpop.permute.xlu1 %2356 }
 0x3bf   : > { %v4366_v20 = vpop.permute.xlu0 %2326  ;;  %v2342_v53 = vadd.f32 %v2338_v38, %v2312_v23 }
 0x3c0   : > { %v2333_v12 = vsel %vm1558_vm12, %v4366_v20, %v4368_v10 }
 0x3c1   : > { %v2341_v40 = vmul.f32 %v2333_v12, %v2319_v14 }
 0x3c2   : > { %v4448_v0 = vpop.permute.xlu1 %2392 }
 0x3c3   : > { %v4370_v4 = vpop.permute.xlu0 %2350  ;;  %v2345_v16 = vadd.f32 %v2341_v40, %v2315_v43 }
 0x3c4   : > { %v2360_v27 = vsel %vm1601_vm1, %v4370_v4, %v4388_v6  ;;  %v2349_v4 = vld [vmem:[%s4596_s4 + $0xd8] sm:$0xc] }
 0x3c5   : > { %v2368_v39 = vmul.f32 %v2360_v27, %v2346_v58  ;;  %v2440_v58 = vld [vmem:[%s4597_s5 + $0x8] sm:$0x3] }
 0x3c6   : > { %v2397_v9 = vpop.permute.xlu1 %2396 }
 0x3c7   : > { %v4390_v51 = vpop.permute.xlu0 %2354 }
 0x3c8   : > { %v2361_v61 = vsel %vm1601_vm1, %v4388_v6, %v4390_v51  ;;  %v2362_v41 = vsel %vm1601_vm1, %v4390_v51, %v4408_v44  ;;  %v2331_v6 = vsel %vm1558_vm12, %v4362_v25, %v4364_v48  ;;  %v2318_v51 = vld [vmem:[%s4596_s4 + $0xd0] sm:$0x3]  ;;  %v2388_v25 = vld [vmem:[%s4596_s4 + $0xc0] sm:$0x30] }
 0x3c9   : > { %v2369_v26 = vmul.f32 %v2361_v61, %v2347_v17  ;;  %v2370_v57 = vmul.f32 %v2362_v41, %v2348_v52 }
 0x3ca   : > { %v2401_v59 = vpop.permute.xlu1 %2400 }
 0x3cb   : > { %v4442_v60 = vpop.permute.xlu0 %2358  ;;  %v2377_v24 = vrot.slane %v2369_v26, 2  ;;  %v2378_v30 = vrot.slane %v2370_v57, 2 }
 0x3cc   : > { %v2363_v8 = vsel %vm1601_vm1, %v4408_v44, %v4442_v60  ;;  %v2332_v44 = vsel %vm1558_vm12, %v4364_v48, %v4366_v20  ;;  %v2389_v60 = vld [vmem:[%s4596_s4 + $0xc8] sm:$0x30]  ;;  %v2390_v48 = vld [vmem:[%s4596_s4 + $0xd0] sm:$0x30]  ;;  %v2391_v20 = vld [vmem:[%s4596_s4 + $0xd8] sm:$0x30] }
 0x3cd   : > { %v2371_v1 = vmul.f32 %v2363_v8, %v2349_v4  ;;  %v2340_v62 = vmul.f32 %v2332_v44, %v2318_v51  ;;  %v2479_v4 = vsub.s32 1, %v4717_v19 }
 0x3cf   : > { %v2395_v5 = vpop.permute.xlu0 %2394  ;;  %v2379_v3 = vrot.slane %v2371_v1, 2  ;;  %v2344_v31 = vadd.f32 %v2340_v62, %v2314_v36 }
 0x3d0   : > { %v2402_v54 = vsel %vm1644_vm2, %v4448_v0, %v2395_v5  ;;  %v2403_v45 = vsel %vm1644_vm2, %v2395_v5, %v2397_v9  ;;  %v2339_v0 = vmul.f32 %v2331_v6, %v2317_v56  ;;  %v2376_v5 = vrot.slane %v2368_v39, 2 }
 0x3d1   : > { %v2410_v47 = vmul.f32 %v2402_v54, %v2388_v25  ;;  %v2411_v18 = vmul.f32 %v2403_v45, %v2389_v60  ;;  %v2386_v35 = vadd.f32 %v2378_v30, %v2344_v31  ;;  %v2387_v56 = vadd.f32 %v2379_v3, %v2345_v16 }
 0x3d2   : > { %v2343_v13 = vadd.f32 %v2339_v0, %v2313_v15  ;;  %v2384_v55 = vadd.f32 %v2376_v5, %v2342_v53 }
 0x3d3   : > { %v2399_v11 = vpop.permute.xlu0 %2398  ;;  %v2418_v21 = vrot.slane %v2410_v47, 4 }
 0x3d4   : > { %v2404_v10 = vsel %vm1644_vm2, %v2397_v9, %v2399_v11  ;;  %v2405_v22 = vsel %vm1644_vm2, %v2399_v11, %v2401_v59  ;;  %v2419_v9 = vrot.slane %v2411_v18, 4  ;;  %v2385_v46 = vadd.f32 %v2377_v24, %v2343_v13  ;;  %v2441_v59 = vld [vmem:[%s4597_s5 + $0x10] sm:$0x3]  ;;  %v2442_v11 = vld [vmem:[%s4597_s5 + $0x18] sm:$0x3] }
 0x3d5   : > { %v2412_v37 = vmul.f32 %v2404_v10, %v2390_v48  ;;  %v2413_v28 = vmul.f32 %v2405_v22, %v2391_v20  ;;  %v2426_v63 = vadd.f32 %v2418_v21, %v2384_v55 }
 0x3d6   : > { %v2427_v32 = vadd.f32 %v2419_v9, %v2385_v46 }
 0x3d7   : > { %v2420_v2 = vrot.slane %v2412_v37, 4  ;;  %v2421_v49 = vrot.slane %v2413_v28, 4 }
 0x3d9   : > { %v2428_v33 = vadd.f32 %v2420_v2, %v2386_v35  ;;  %v2429_v42 = vadd.f32 %v2421_v49, %v2387_v56 }
 0x3db   : > { %v2451_v29 = vpop.permute.xlu1 %2450 }
 0x3e1   : > { %v2475_v60 = vpop.permute.xlu1 %2474 }
 0x3e6   : > { %v2521_v43 = vpop.permute.xlu1 %2520 }
 0x3eb   : > { %v2529_v21 = vpop.permute.xlu1 %2528 }
 0x425   : > { %v2433_v27 = vpop.permute.xlu0 %2432 }
 0x426   : > { %v2435_v17 = vmul.f32 %v2433_v27, %v2426_v63  ;;  %v2436_v52 = vmul.f32 %v2433_v27, %v2427_v32  ;;  %v2437_v61 = vmul.f32 %v2433_v27, %v2428_v33  ;;  %v2438_v41 = vmul.f32 %v2433_v27, %v2429_v42 }
 0x428   : > { %v2443_v8 = vadd.f32 %v2439_v7, %v2435_v17  ;;  %v2444_v34 = vadd.f32 %v2440_v58, %v2436_v52  ;;  %v2445_v6 = vadd.f32 %v2441_v59, %v2437_v61  ;;  %v2446_v51 = vadd.f32 %v2442_v11, %v2438_v41 }
 0x42a   : > { %v2456_v14 = vrot.slane %v2443_v8, %v4540_v50  ;;  %v2460_v44 = vrot.slane %v2444_v34, %v4540_v50  ;;  %v2464_v12 = vrot.slane %v2445_v6, %v4540_v50  ;;  %v2468_v25 = vrot.slane %v2446_v51, %v4540_v50  ;;  %v2503_v62 = vpop.permute.xlu0 %2502 }
 0x42b   : > { %v2480_v54 = vrot.slane %v2443_v8, %v2479_v4  ;;  %v2484_v45 = vrot.slane %v2444_v34, %v2479_v4  ;;  %v2488_v48 = vrot.slane %v2445_v6, %v2479_v4  ;;  %v2492_v20 = vrot.slane %v2446_v51, %v2479_v4 }
 0x42c   : > { %v2469_v10 = vmul.f32 %v2456_v14, %v2451_v29  ;;  %v2470_v22 = vmul.f32 %v2460_v44, %v2451_v29  ;;  %v2471_v39 = vmul.f32 %v2464_v12, %v2451_v29  ;;  %v2472_v26 = vmul.f32 %v2468_v25, %v2451_v29 }
 0x42d   : > { %v2493_v57 = vmul.f32 %v2480_v54, %v2475_v60  ;;  %v2494_v1 = vmul.f32 %v2484_v45, %v2475_v60  ;;  %v2495_v38 = vmul.f32 %v2488_v48, %v2475_v60  ;;  %v2496_v0 = vmul.f32 %v2492_v20, %v2475_v60  ;;  %v2559_v48 = vld [vmem:[%s3248_s24] sm:$0xff] }
 0x42f   : > { %v2497_v40 = vadd.f32 %v2493_v57, %v2469_v10  ;;  %v2498_v47 = vadd.f32 %v2494_v1, %v2470_v22  ;;  %v2499_v18 = vadd.f32 %v2495_v38, %v2471_v39  ;;  %v2500_v37 = vadd.f32 %v2496_v0, %v2472_v26  ;;  %v2553_v7 = vpop.permute.xlu0 %2552  ;;  %v2560_v10 = vld [vmem:[%s3248_s24 + $0x8] sm:$0xff]  ;;  %v2561_v26 = vld [vmem:[%s3248_s24 + $0x10] sm:$0xff]  ;;  %v2562_v38 = vld [vmem:[%s3248_s24 + $0x18] sm:$0xff] }
 0x431   : > { %v2505_v28 = vadd.f32 %v2503_v62, %v2497_v40  ;;  %v2506_v23 = vadd.f32 %v2503_v62, %v2498_v47  ;;  %v2507_v15 = vadd.f32 %v2503_v62, %v2499_v18  ;;  %v2508_v36 = vadd.f32 %v2503_v62, %v2500_v37 }
 0x433   : > { %v2509_v5 = vmax.f32 %v2505_v28, 0.0  ;;  %v2510_v24 = vmax.f32 %v2506_v23, 0.0  ;;  %v2511_v30 = vmax.f32 %v2507_v15, 0.0  ;;  %v2512_v3 = vmax.f32 %v2508_v36, 0.0 }
 0x435   : > { %v2513_v53 = vmin.f32 %v2509_v5, 6.0  ;;  %v2514_v13 = vmin.f32 %v2510_v24, 6.0  ;;  %v2515_v31 = vmin.f32 %v2511_v30, 6.0  ;;  %v2516_v16 = vmin.f32 %v2512_v3, 6.0 }
 0x437   : > { %v2535_v9 = vrot.slane %v2513_v53, 1  ;;  %v2536_v2 = vrot.slane %v2514_v13, 1  ;;  %v2537_v49 = vrot.slane %v2515_v31, 1  ;;  %v2538_v55 = vrot.slane %v2516_v16, 1 }
 0x438   : > { %v2523_v46 = vmul.f32 %v2521_v43, %v2513_v53  ;;  %v2524_v35 = vmul.f32 %v2521_v43, %v2514_v13  ;;  %v2525_v56 = vmul.f32 %v2521_v43, %v2515_v31  ;;  %v2526_v19 = vmul.f32 %v2521_v43, %v2516_v16 }
 0x439   : > { %v2543_v63 = vmul.f32 %v2535_v9, %v2529_v21  ;;  %v2544_v32 = vmul.f32 %v2536_v2, %v2529_v21  ;;  %v2545_v33 = vmul.f32 %v2537_v49, %v2529_v21  ;;  %v2546_v42 = vmul.f32 %v2538_v55, %v2529_v21 }
 0x43b   : > { %v2547_v29 = vadd.f32 %v2543_v63, %v2523_v46  ;;  %v2548_v58 = vadd.f32 %v2544_v32, %v2524_v35  ;;  %v2549_v59 = vadd.f32 %v2545_v33, %v2525_v56  ;;  %v2550_v11 = vadd.f32 %v2546_v42, %v2526_v19 }
 0x43d   : > { %v2555_v27 = vadd.f32 %v2553_v7, %v2547_v29  ;;  %v2556_v17 = vadd.f32 %v2553_v7, %v2548_v58  ;;  %v2557_v52 = vadd.f32 %v2553_v7, %v2549_v59  ;;  %v2558_v61 = vadd.f32 %v2553_v7, %v2550_v11 }
 0x43f   : > { %v2819_v41 = vmul.f32 -1.442695, %v2555_v27  ;;  %v2820_v4 = vmul.f32 -1.442695, %v2556_v17  ;;  %v2821_v8 = vmul.f32 -1.442695, %v2557_v52 }
 0x440   : > { %v2822_v34 = vmul.f32 -1.442695, %v2558_v61 }
 0x441   : > { %3035 = vpow2.f32 %v2819_v41 }
 0x442   : > { %3037 = vpow2.f32 %v2820_v4 }
 0x443   : > { %3039 = vpow2.f32 %v2821_v8 }
 0x444   : > { %3041 = vpow2.f32 %v2822_v34 }
 0x44b   : > { %v3036_v6 = vpop.eup %3035 }
 0x44c   : > { %v3038_v51 = vpop.eup %3037  ;;  %v2575_v14 = vadd.f32 1.0, %v3036_v6 }
 0x44d   : > { %v3040_v44 = vpop.eup %3039  ;;  %v2576_v12 = vadd.f32 1.0, %v3038_v51 }
 0x44e   : > { %v3042_v25 = vpop.eup %3041  ;;  %v2577_v60 = vadd.f32 1.0, %v3040_v44  ;;  %3043 = vrcp.f32 %v2575_v14 }
 0x44f   : > { %v2578_v54 = vadd.f32 1.0, %v3042_v25  ;;  %3045 = vrcp.f32 %v2576_v12 }
 0x450   : > { %3047 = vrcp.f32 %v2577_v60 }
 0x451   : > { %3049 = vrcp.f32 %v2578_v54 }
 0x458   : > { %v3044_v45 = vpop.eup %3043 }
 0x459   : > { %v3046_v20 = vpop.eup %3045  ;;  %v2590_v22 = vrot.slane %v3044_v45, %v4540_v50 }
 0x45a   : > { %v3048_v39 = vpop.eup %3047  ;;  %v2594_v57 = vrot.slane %v3046_v20, %v4540_v50 }
 0x45b   : > { %v3050_v1 = vpop.eup %3049  ;;  %v2598_v0 = vrot.slane %v3048_v39, %v4540_v50  ;;  %v2603_v62 = vmul.f32 %v2590_v22, %v2559_v48 }
 0x45c   : > { %v2602_v40 = vrot.slane %v3050_v1, %v4540_v50  ;;  %v2604_v47 = vmul.f32 %v2594_v57, %v2560_v10 }
 0x45d   : > { %v2605_v18 = vmul.f32 %v2598_v0, %v2561_v26  ;;  %2607 = vst [vmem:[%s3253_s9] sm:$0xff] %v2603_v62 }
 0x45e   : > { %v2606_v37 = vmul.f32 %v2602_v40, %v2562_v38  ;;  %2608 = vst [vmem:[%s3253_s9 + $0x8] sm:$0xff] %v2604_v47 }
 0x45f   : > { %2609 = vst [vmem:[%s3253_s9 + $0x10] sm:$0xff] %v2605_v18 }
 0x460   : > { %2610 = vst [vmem:[%s3253_s9 + $0x18] sm:$0xff] %v2606_v37 }
 0x461 PF: > { %s17_s30 = sadd.s32 1, %s3105_s30   ;;  %s4718_s13 = sld [smem:[#allocation5_spill]] }
 0x462   : > { %p14_p0 = scmp.ge.s32.totalorder %s17_s30, 6   ;;  %s4719_s8 = sld [smem:[#allocation6_spill]] }
 0x463   : > { %s4720_s24 = smov %s3085_s25  ;;  %s4721_s25 = smov %s3224_s12 }
 0x464   : > { %s4722_s26 = smov %s3097_s28  ;;  %s4723_s27 = smov %s3101_s29 }
 0x465   :  { %16 = sbr.rel (!%p14_p0) target bundleno = 6 (0x6), region = 140 }
 0x467   : > { %s4724_s28 = smov %s4718_s13 }
 0x468   : > { %s4725_s29 = smov %s4719_s8 }

</bundles_post_ra>
